<compile_context>
chip_gen: v7x
topology: tpu7x:2x2x1
jax: 0.10.0
libtpu: 0.0.40
codegen_flags: <defaults>
</compile_context>

<pallas_src>
import functools

import jax
import jax.numpy as jnp
from jax import lax
from jax.experimental import pallas as pl
from jax.experimental.pallas import tpu as pltpu

KSIZE = 7
PAD = KSIZE // 2
CH_CHUNK = 8                               # sublane chunk for the channel reduction
TARGET_BLOCK_BYTES = 2 * 1024 * 1024       # per-block target for split-path C tiling


# ------------------------------ sizing helpers ------------------------------

def _vmem_budget_bytes():
    """Generation-aware scoped-VMEM budget (v5e/v6e: 128 MiB physical, v7x: 64 MiB)."""
    cap = 64 * 1024 * 1024                 # conservative fallback (v7x-sized)
    try:
        info = pltpu.get_tpu_info()
        cap = int(getattr(info, "vmem_capacity_bytes", cap))
    except Exception:
        pass
    return max(16 * 1024 * 1024, min(cap // 2, 64 * 1024 * 1024))


def _pick_c_tile(c_padded, hw, budget):
    """Largest multiple-of-8 tile of C (dividing c_padded) within the block budget."""
    target = max(8 * hw * 4, min(TARGET_BLOCK_BYTES, budget // 8))
    cap = max(8, (target // (hw * 4)) // 8 * 8)
    tc = min(cap, c_padded)
    tc = max(8, (tc // 8) * 8)
    while tc > 8 and c_padded % tc != 0:
        tc -= 8
    if c_padded % tc != 0:
        tc = 8
    return tc


# ------------------------------ in-kernel helpers ------------------------------

def _channel_sum_max(x_ref, n_rows, c_base, c_valid, need_mask):
    """Sum & max over the channel (sublane) axis of a (1, n_rows, HW) block.

    Each sublane chunk is loaded once and feeds BOTH the running sum and the
    running max.  When `need_mask` (channel padding), padded rows are excluded
    from the max (they are zeros, so the sum is already correct).
    Returns ((1, 1, HW) sum, (1, 1, HW) max), both float32.
    """
    hw = x_ref.shape[2]
    neg = float(jnp.finfo(jnp.float32).min)

    def block_sum_max(rows, row0):
        # rows: (1, k, hw) float32
        if need_mask:
            ridx = c_base + row0 + lax.broadcasted_iota(jnp.int32, rows.shape, 1)
            rows_for_max = jnp.where(ridx < c_valid, rows, neg)
        else:
            rows_for_max = rows
        return (jnp.sum(rows, axis=1, keepdims=True),
                jnp.max(rows_for_max, axis=1, keepdims=True))

    if n_rows % CH_CHUNK == 0 and n_rows > CH_CHUNK:
        n_chunks = n_rows // CH_CHUNK

        def body(i, carry):
            s, m = carry
            start = pl.multiple_of(i * CH_CHUNK, CH_CHUNK)
            rows = x_ref[:, pl.ds(start, CH_CHUNK), :].astype(jnp.float32)
            ps, pm = block_sum_max(rows, i * CH_CHUNK)
            return s + ps, jnp.maximum(m, pm)

        init = (jnp.zeros((1, 1, hw), jnp.float32),
                jnp.full((1, 1, hw), neg, jnp.float32))
        return lax.fori_loop(0, n_chunks, body, init, unroll=(n_chunks <= 16))
    else:
        rows = x_ref[...].astype(jnp.float32)
        return block_sum_max(rows, 0)


def _conv7x7_sigmoid_flat(w_ref, colmask_ref, s_map, m_map, fpad_ref, W):
    """7x7 conv (2 -> 1 ch, pad=3, no bias) + sigmoid on flattened (1, HW) maps.

    Works in flat lane space: the maps are written into a row-zero-padded flat
    scratch; each tap is a static lane-shifted read; column wrap-around across
    rows is removed by the precomputed per-kx column masks.  No reshapes.
    """
    hw = s_map.shape[1]
    padlen = PAD * W + PAD

    # Zero the pad scratch every use (cheap) -- no persistent-scratch assumptions.
    fpad_ref[...] = jnp.zeros_like(fpad_ref)
    fpad_ref[0:1, padlen:padlen + hw] = s_map
    fpad_ref[1:2, padlen:padlen + hw] = m_map

    cmasks = [colmask_ref[kx:kx + 1, :] for kx in range(KSIZE)]

    acc = jnp.zeros((1, hw), jnp.float32)
    for ky in range(KSIZE):
        for kx in range(KSIZE):
            off = padlen + (ky - PAD) * W + (kx - PAD)
            s_sh = fpad_ref[0:1, off:off + hw]
            m_sh = fpad_ref[1:2, off:off + hw]
            w_s = w_ref[(0 * KSIZE + ky) * KSIZE + kx]
            w_m = w_ref[(1 * KSIZE + ky) * KSIZE + kx]
            acc = acc + cmasks[kx] * (s_sh * w_s + m_sh * w_m)
    return jax.nn.sigmoid(acc)


# --------------------- fully fused single-pass kernel (grid = (N,)) ---------------------

def _fused_kernel(w_ref, colmask_ref, x_ref, o_ref, fpad_ref, *, W):
    # w_ref      : SMEM f32[98]          flattened conv weights (avg branch pre-scaled by 1/C)
    # colmask_ref: VMEM f32[7, HW]       per-kx column validity masks
    # x_ref      : VMEM    [1, C, HW]    one batch element, lane-dense
    # o_ref      : VMEM    [1, C, HW]
    # fpad_ref   : VMEM f32[2, HW+2*(3W+3)]  flat padded sum/max maps
    C = x_ref.shape[1]
    s, m = _channel_sum_max(x_ref, C, 0, C, False)
    attn = _conv7x7_sigmoid_flat(w_ref, colmask_ref, s[0], m[0], fpad_ref, W)   # (1, HW)
    o_ref[0] = (x_ref[0].astype(jnp.float32) * attn).astype(o_ref.dtype)


# --------------------- split path: reduce + conv fused, then multiply ---------------------

def _reduce_conv_kernel(w_ref, colmask_ref, x_ref, attn_ref,
                        sum_ref, max_ref, fpad_ref, *, W, c_valid, need_mask):
    # Grid (N, C_tiles); C axis last + "arbitrary".  Sum/max live only in VMEM
    # scratch; the conv + sigmoid runs in the last-C-step epilogue and writes the
    # lane-dense (1, 1, HW) attention block directly.
    c = pl.program_id(1)
    tc = x_ref.shape[1]
    ps, pm = _channel_sum_max(x_ref, tc, c * tc, c_valid, need_mask)

    @pl.when(c == 0)
    def _():
        sum_ref[...] = ps
        max_ref[...] = pm

    @pl.when(c > 0)
    def _():
        sum_ref[...] = sum_ref[...] + ps
        max_ref[...] = jnp.maximum(max_ref[...], pm)

    @pl.when(c == pl.num_programs(1) - 1)
    def _():
        attn_ref[0] = _conv7x7_sigmoid_flat(
            w_ref, colmask_ref, sum_ref[0], max_ref[0], fpad_ref, W)


def _mul_kernel(x_ref, a_ref, o_ref):
    # x_ref: [1, tc, HW]; a_ref: f32[1, 1, HW]; o_ref: [1, tc, HW]
    o_ref[0] = (x_ref[0].astype(jnp.float32) * a_ref[0]).astype(o_ref.dtype)


# ------------------------------------ wrapper ------------------------------------

@functools.partial(jax.jit, static_argnames=("force_split", "c_tile"))
def cbam_spatial(x, conv_weight, force_split=False, c_tile=None):
    """x: (N, C, H, W); conv_weight: (1, 2, 7, 7) f32 (PyTorch OIHW)."""
    N, C, H, W = x.shape
    HW = H * W
    padlen = PAD * W + PAD
    fpad_cols = HW + 2 * padlen
    budget = _vmem_budget_bytes()

    x2d = x.reshape(N, C, HW)                                   # free relabel -> lane dense

    # Fold the 1/C of the channel mean into the avg-branch weights (conv is linear).
    scale = jnp.array([1.0 / C, 1.0], jnp.float32).reshape(1, 2, 1, 1)
    w_flat = (conv_weight.astype(jnp.float32) * scale).reshape(-1)          # (98,)

    # Per-kx column masks for the flat-space conv (kills row wrap-around).
    col = (jnp.arange(HW, dtype=jnp.int32) % W).reshape(1, HW)
    kxs = jnp.arange(KSIZE, dtype=jnp.int32).reshape(KSIZE, 1)
    shifted_col = col + (kxs - PAD)
    colmask = ((shifted_col >= 0) & (shifted_col < W)).astype(jnp.float32)  # (7, HW)

    itemsize = x.dtype.itemsize
    fused_bytes = 4 * C * HW * itemsize + (KSIZE * HW + 2 * fpad_cols) * 4 + (1 << 16)
    use_fused = (not force_split) and (fused_bytes <= budget)

    if use_fused:
        # ---- single pass: reduce + conv + sigmoid + multiply, one launch ----
        out2d = pl.pallas_call(
            functools.partial(_fused_kernel, W=W),
            out_shape=jax.ShapeDtypeStruct((N, C, HW), x.dtype),
            grid_spec=pltpu.PrefetchScalarGridSpec(
                num_scalar_prefetch=0,
                grid=(N,),
                in_specs=[
                    pl.BlockSpec(memory_space=pltpu.MemorySpace.SMEM),      # weights
                    pl.BlockSpec((KSIZE, HW), lambda n: (0, 0)),            # column masks
                    pl.BlockSpec((1, C, HW), lambda n: (n, 0, 0)),          # x slab
                ],
                out_specs=pl.BlockSpec((1, C, HW), lambda n: (n, 0, 0)),
                scratch_shapes=[pltpu.VMEM((2, fpad_cols), jnp.float32)],
            ),
            compiler_params=pltpu.CompilerParams(
                dimension_semantics=("parallel",),
                vmem_limit_bytes=budget,
            ),
        )(w_flat, colmask, x2d)
        return out2d.reshape(N, C, H, W)

    # ---- split path: C does not fit as one slab ----
    if C % 8 == 0:
        Cp, x2d_p = C, x2d
    else:
        Cp = ((C + 7) // 8) * 8
        x2d_p = jnp.pad(x2d, ((0, 0), (0, Cp - C), (0, 0)))     # zero-pad channels
    need_mask = (Cp != C)

    if c_tile is not None:
        assert c_tile % 8 == 0 and Cp % c_tile == 0, "c_tile must be a multiple of 8 dividing padded C"
        tc = c_tile
    else:
        tc = _pick_c_tile(Cp, HW, budget)
    nct = Cp // tc

    # pass 1: channel sum/max with fused 7x7 conv + sigmoid in the epilogue.
    attn = pl.pallas_call(
        functools.partial(_reduce_conv_kernel, W=W, c_valid=C, need_mask=need_mask),
        out_shape=jax.ShapeDtypeStruct((N, 1, HW), jnp.float32),
        grid_spec=pltpu.PrefetchScalarGridSpec(
            num_scalar_prefetch=0,
            grid=(N, nct),
            in_specs=[
                pl.BlockSpec(memory_space=pltpu.MemorySpace.SMEM),          # weights
                pl.BlockSpec((KSIZE, HW), lambda n, c: (0, 0)),             # column masks
                pl.BlockSpec((1, tc, HW), lambda n, c: (n, c, 0)),          # x tile
            ],
            out_specs=pl.BlockSpec((1, 1, HW), lambda n, c: (n, 0, 0)),     # lane-dense attn
            scratch_shapes=[
                pltpu.VMEM((1, 1, HW), jnp.float32),                        # running sum
                pltpu.VMEM((1, 1, HW), jnp.float32),                        # running max
                pltpu.VMEM((2, fpad_cols), jnp.float32),                    # flat conv pad
            ],
        ),
        compiler_params=pltpu.CompilerParams(
            dimension_semantics=("parallel", "arbitrary"),
            vmem_limit_bytes=budget,
        ),
    )(w_flat, colmask, x2d_p)

    # pass 2: out = x * attn (both axes parallel).
    out2d = pl.pallas_call(
        _mul_kernel,
        out_shape=jax.ShapeDtypeStruct((N, Cp, HW), x.dtype),
        grid_spec=pltpu.PrefetchScalarGridSpec(
            num_scalar_prefetch=0,
            grid=(N, nct),
            in_specs=[
                pl.BlockSpec((1, tc, HW), lambda n, c: (n, c, 0)),
                pl.BlockSpec((1, 1, HW), lambda n, c: (n, 0, 0)),
            ],
            out_specs=pl.BlockSpec((1, tc, HW), lambda n, c: (n, c, 0)),
        ),
        compiler_params=pltpu.CompilerParams(
            dimension_semantics=("parallel", "parallel"),
            vmem_limit_bytes=budget,
        ),
    )(x2d_p, attn)

    return out2d[:, :C, :].reshape(N, C, H, W)


def cbam_spatial_ref(x, conv_weight):
    """Pure-JAX reference mirroring the PyTorch forward."""
    avg_out = jnp.mean(x, axis=1, keepdims=True)
    max_out = jnp.max(x, axis=1, keepdims=True)
    out = jnp.concatenate([avg_out, max_out], axis=1)           # (N, 2, H, W)
    out = lax.conv_general_dilated(
        out, conv_weight,
        window_strides=(1, 1),
        padding=((PAD, PAD), (PAD, PAD)),
        dimension_numbers=("NCHW", "OIHW", "NCHW"),
    )                                                            # (N, 1, H, W)
    return x * jax.nn.sigmoid(out)


if __name__ == "__main__":
    key = jax.random.PRNGKey(0)
    kx_, kw_ = jax.random.split(key)

    fan_in = 2 * KSIZE * KSIZE
    bound = (1.0 / fan_in) ** 0.5
    conv_weight = jax.random.uniform(
        kw_, (1, 2, KSIZE, KSIZE), jnp.float32, minval=-bound, maxval=bound)

    # Test 1: fully fused single-pass path (small slab).
    x1 = jax.random.normal(kx_, (2, 4, 16, 16), dtype=jnp.float32)
    out1 = jax.block_until_ready(cbam_spatial(x1, conv_weight))
    ref1 = cbam_spatial_ref(x1, conv_weight)
    assert out1.shape == x1.shape
    assert jnp.allclose(out1, ref1, atol=1e-5, rtol=1e-5), "fused path mismatch"

    # Test 2: split path (reduce+conv fused epilogue, then multiply) with C tiling.
    x2 = jax.random.normal(jax.random.fold_in(kx_, 2), (2, 32, 16, 16), dtype=jnp.float32)
    out2 = jax.block_until_ready(cbam_spatial(x2, conv_weight, force_split=True, c_tile=16))
    ref2 = cbam_spatial_ref(x2, conv_weight)
    assert jnp.allclose(out2, ref2, atol=1e-5, rtol=1e-5), "split path mismatch"

    # Test 3: split path with channel padding (C not a multiple of 8).
    x3 = jax.random.normal(jax.random.fold_in(kx_, 3), (1, 12, 16, 16), dtype=jnp.float32)
    out3 = jax.block_until_ready(cbam_spatial(x3, conv_weight, force_split=True, c_tile=8))
    ref3 = cbam_spatial_ref(x3, conv_weight)
    assert jnp.allclose(out3, ref3, atol=1e-5, rtol=1e-5), "padded split path mismatch"

    print("KERNEL_OK")
</pallas_src>

<mosaic_0001>
module attributes {stable_mosaic.version = 11 : i64} {
  func.func @_fused_kernel(%arg0: i32, %arg1: memref<98xf32, #tpu.memory_space<smem>>, %arg2: memref<7x256xf32, #tpu.memory_space<vmem>>, %arg3: memref<1x4x256xf32, #tpu.memory_space<vmem>>, %arg4: memref<1x4x256xf32, #tpu.memory_space<vmem>>, %arg5: memref<2x358xf32, #tpu.memory_space<vmem>>) attributes {dimension_semantics = [#tpu.dimension_semantics<parallel>], iteration_bounds = array<i64: 2>, scalar_prefetch = 0 : i64, scratch_operands = 1 : i64, tpu.core_type = #tpu.core_type<tc>, window_params = [{transform_indices = @transform_0, window_bounds = array<i64: 98>}, {pipeline_mode = #tpu.pipeline_mode<synchronous>, transform_indices = @transform_1, window_bounds = array<i64: 7, 256>}, {transform_indices = @transform_2, window_bounds = array<i64: 1, 4, 256>}, {transform_indices = @transform_3, window_bounds = array<i64: 1, 4, 256>}]} {
    %c0 = arith.constant 0 : index
    %c0_0 = arith.constant 0 : index
    %c0_1 = arith.constant 0 : index
    %0 = vector.load %arg3[%c0, %c0_0, %c0_1] : memref<1x4x256xf32, #tpu.memory_space<vmem>>, vector<1x4x256xf32>
    %cst = arith.constant dense<0.000000e+00> : vector<1x256xf32>
    %1 = vector.multi_reduction <add>, %0, %cst [1] : vector<1x4x256xf32> to vector<1x256xf32>
    %2 = vector.shape_cast %1 : vector<1x256xf32> to vector<1x1x256xf32>
    %cst_2 = arith.constant dense<0xFF800000> : vector<1x256xf32>
    %3 = vector.multi_reduction <maximumf>, %0, %cst_2 [1] : vector<1x4x256xf32> to vector<1x256xf32>
    %4 = vector.shape_cast %3 : vector<1x256xf32> to vector<1x1x256xf32>
    %5 = vector.shape_cast %2 : vector<1x1x256xf32> to vector<1x256xf32>
    %6 = vector.shape_cast %4 : vector<1x1x256xf32> to vector<1x256xf32>
    %cst_3 = arith.constant 0.000000e+00 : f32
    %7 = vector.broadcast %cst_3 : f32 to vector<2x358xf32>
    %c0_4 = arith.constant 0 : index
    %c0_5 = arith.constant 0 : index
    %8 = vector.load %arg5[%c0_4, %c0_5] : memref<2x358xf32, #tpu.memory_space<vmem>>, vector<2x358xf32>
    tpu.vector_store %arg5[%c0_4, %c0_5], %7 {strides = array<i32>} : memref<2x358xf32, #tpu.memory_space<vmem>>, vector<2x358xf32>,
    %c0_6 = arith.constant 0 : index
    %c51 = arith.constant 51 : index
    %9 = vector.load %arg5[%c0_6, %c51] : memref<2x358xf32, #tpu.memory_space<vmem>>, vector<1x256xf32>
    tpu.vector_store %arg5[%c0_6, %c51], %5 {strides = array<i32>} : memref<2x358xf32, #tpu.memory_space<vmem>>, vector<1x256xf32>,
    %c1 = arith.constant 1 : index
    %c51_7 = arith.constant 51 : index
    %10 = vector.load %arg5[%c1, %c51_7] : memref<2x358xf32, #tpu.memory_space<vmem>>, vector<1x256xf32>
    tpu.vector_store %arg5[%c1, %c51_7], %6 {strides = array<i32>} : memref<2x358xf32, #tpu.memory_space<vmem>>, vector<1x256xf32>,
    %c0_8 = arith.constant 0 : index
    %c0_9 = arith.constant 0 : index
    %11 = vector.load %arg2[%c0_8, %c0_9] : memref<7x256xf32, #tpu.memory_space<vmem>>, vector<1x256xf32>
    %c1_10 = arith.constant 1 : index
    %c0_11 = arith.constant 0 : index
    %12 = vector.load %arg2[%c1_10, %c0_11] : memref<7x256xf32, #tpu.memory_space<vmem>>, vector<1x256xf32>
    %c2 = arith.constant 2 : index
    %c0_12 = arith.constant 0 : index
    %13 = vector.load %arg2[%c2, %c0_12] : memref<7x256xf32, #tpu.memory_space<vmem>>, vector<1x256xf32>
    %c3 = arith.constant 3 : index
    %c0_13 = arith.constant 0 : index
    %14 = vector.load %arg2[%c3, %c0_13] : memref<7x256xf32, #tpu.memory_space<vmem>>, vector<1x256xf32>
    %c4 = arith.constant 4 : index
    %c0_14 = arith.constant 0 : index
    %15 = vector.load %arg2[%c4, %c0_14] : memref<7x256xf32, #tpu.memory_space<vmem>>, vector<1x256xf32>
    %c5 = arith.constant 5 : index
    %c0_15 = arith.constant 0 : index
    %16 = vector.load %arg2[%c5, %c0_15] : memref<7x256xf32, #tpu.memory_space<vmem>>, vector<1x256xf32>
    %c6 = arith.constant 6 : index
    %c0_16 = arith.constant 0 : index
    %17 = vector.load %arg2[%c6, %c0_16] : memref<7x256xf32, #tpu.memory_space<vmem>>, vector<1x256xf32>
    %cst_17 = arith.constant 0.000000e+00 : f32
    %18 = vector.broadcast %cst_17 : f32 to vector<1x256xf32>
    %c0_18 = arith.constant 0 : index
    %c0_19 = arith.constant 0 : index
    %19 = vector.load %arg5[%c0_18, %c0_19] : memref<2x358xf32, #tpu.memory_space<vmem>>, vector<1x256xf32>
    %c1_20 = arith.constant 1 : index
    %c0_21 = arith.constant 0 : index
    %20 = vector.load %arg5[%c1_20, %c0_21] : memref<2x358xf32, #tpu.memory_space<vmem>>, vector<1x256xf32>
    %c0_22 = arith.constant 0 : index
    %21 = memref.load %arg1[%c0_22] : memref<98xf32, #tpu.memory_space<smem>>
    %c49 = arith.constant 49 : index
    %22 = memref.load %arg1[%c49] : memref<98xf32, #tpu.memory_space<smem>>
    %23 = vector.broadcast %21 : f32 to vector<1x256xf32>
    %24 = arith.mulf %19, %23 : vector<1x256xf32>
    %25 = vector.broadcast %22 : f32 to vector<1x256xf32>
    %26 = arith.mulf %20, %25 : vector<1x256xf32>
    %27 = arith.addf %24, %26 : vector<1x256xf32>
    %28 = arith.mulf %11, %27 : vector<1x256xf32>
    %29 = arith.addf %18, %28 : vector<1x256xf32>
    %c0_23 = arith.constant 0 : index
    %c1_24 = arith.constant 1 : index
    %30 = vector.load %arg5[%c0_23, %c1_24] : memref<2x358xf32, #tpu.memory_space<vmem>>, vector<1x256xf32>
    %c1_25 = arith.constant 1 : index
    %c1_26 = arith.constant 1 : index
    %31 = vector.load %arg5[%c1_25, %c1_26] : memref<2x358xf32, #tpu.memory_space<vmem>>, vector<1x256xf32>
    %c1_27 = arith.constant 1 : index
    %32 = memref.load %arg1[%c1_27] : memref<98xf32, #tpu.memory_space<smem>>
    %c50 = arith.constant 50 : index
    %33 = memref.load %arg1[%c50] : memref<98xf32, #tpu.memory_space<smem>>
    %34 = vector.broadcast %32 : f32 to vector<1x256xf32>
    %35 = arith.mulf %30, %34 : vector<1x256xf32>
    %36 = vector.broadcast %33 : f32 to vector<1x256xf32>
    %37 = arith.mulf %31, %36 : vector<1x256xf32>
    %38 = arith.addf %35, %37 : vector<1x256xf32>
    %39 = arith.mulf %12, %38 : vector<1x256xf32>
    %40 = arith.addf %29, %39 : vector<1x256xf32>
    %c0_28 = arith.constant 0 : index
    %c2_29 = arith.constant 2 : index
    %41 = vector.load %arg5[%c0_28, %c2_29] : memref<2x358xf32, #tpu.memory_space<vmem>>, vector<1x256xf32>
    %c1_30 = arith.constant 1 : index
    %c2_31 = arith.constant 2 : index
    %42 = vector.load %arg5[%c1_30, %c2_31] : memref<2x358xf32, #tpu.memory_space<vmem>>, vector<1x256xf32>
    %c2_32 = arith.constant 2 : index
    %43 = memref.load %arg1[%c2_32] : memref<98xf32, #tpu.memory_space<smem>>
    %c51_33 = arith.constant 51 : index
    %44 = memref.load %arg1[%c51_33] : memref<98xf32, #tpu.memory_space<smem>>
    %45 = vector.broadcast %43 : f32 to vector<1x256xf32>
    %46 = arith.mulf %41, %45 : vector<1x256xf32>
    %47 = vector.broadcast %44 : f32 to vector<1x256xf32>
    %48 = arith.mulf %42, %47 : vector<1x256xf32>
    %49 = arith.addf %46, %48 : vector<1x256xf32>
    %50 = arith.mulf %13, %49 : vector<1x256xf32>
    %51 = arith.addf %40, %50 : vector<1x256xf32>
    %c0_34 = arith.constant 0 : index
    %c3_35 = arith.constant 3 : index
    %52 = vector.load %arg5[%c0_34, %c3_35] : memref<2x358xf32, #tpu.memory_space<vmem>>, vector<1x256xf32>
    %c1_36 = arith.constant 1 : index
    %c3_37 = arith.constant 3 : index
    %53 = vector.load %arg5[%c1_36, %c3_37] : memref<2x358xf32, #tpu.memory_space<vmem>>, vector<1x256xf32>
    %c3_38 = arith.constant 3 : index
    %54 = memref.load %arg1[%c3_38] : memref<98xf32, #tpu.memory_space<smem>>
    %c52 = arith.constant 52 : index
    %55 = memref.load %arg1[%c52] : memref<98xf32, #tpu.memory_space<smem>>
    %56 = vector.broadcast %54 : f32 to vector<1x256xf32>
    %57 = arith.mulf %52, %56 : vector<1x256xf32>
    %58 = vector.broadcast %55 : f32 to vector<1x256xf32>
    %59 = arith.mulf %53, %58 : vector<1x256xf32>
    %60 = arith.addf %57, %59 : vector<1x256xf32>
    %61 = arith.mulf %14, %60 : vector<1x256xf32>
    %62 = arith.addf %51, %61 : vector<1x256xf32>
    %c0_39 = arith.constant 0 : index
    %c4_40 = arith.constant 4 : index
    %63 = vector.load %arg5[%c0_39, %c4_40] : memref<2x358xf32, #tpu.memory_space<vmem>>, vector<1x256xf32>
    %c1_41 = arith.constant 1 : index
    %c4_42 = arith.constant 4 : index
    %64 = vector.load %arg5[%c1_41, %c4_42] : memref<2x358xf32, #tpu.memory_space<vmem>>, vector<1x256xf32>
    %c4_43 = arith.constant 4 : index
    %65 = memref.load %arg1[%c4_43] : memref<98xf32, #tpu.memory_space<smem>>
    %c53 = arith.constant 53 : index
    %66 = memref.load %arg1[%c53] : memref<98xf32, #tpu.memory_space<smem>>
    %67 = vector.broadcast %65 : f32 to vector<1x256xf32>
    %68 = arith.mulf %63, %67 : vector<1x256xf32>
    %69 = vector.broadcast %66 : f32 to vector<1x256xf32>
    %70 = arith.mulf %64, %69 : vector<1x256xf32>
    %71 = arith.addf %68, %70 : vector<1x256xf32>
    %72 = arith.mulf %15, %71 : vector<1x256xf32>
    %73 = arith.addf %62, %72 : vector<1x256xf32>
    %c0_44 = arith.constant 0 : index
    %c5_45 = arith.constant 5 : index
    %74 = vector.load %arg5[%c0_44, %c5_45] : memref<2x358xf32, #tpu.memory_space<vmem>>, vector<1x256xf32>
    %c1_46 = arith.constant 1 : index
    %c5_47 = arith.constant 5 : index
    %75 = vector.load %arg5[%c1_46, %c5_47] : memref<2x358xf32, #tpu.memory_space<vmem>>, vector<1x256xf32>
    %c5_48 = arith.constant 5 : index
    %76 = memref.load %arg1[%c5_48] : memref<98xf32, #tpu.memory_space<smem>>
    %c54 = arith.constant 54 : index
    %77 = memref.load %arg1[%c54] : memref<98xf32, #tpu.memory_space<smem>>
    %78 = vector.broadcast %76 : f32 to vector<1x256xf32>
    %79 = arith.mulf %74, %78 : vector<1x256xf32>
    %80 = vector.broadcast %77 : f32 to vector<1x256xf32>
    %81 = arith.mulf %75, %80 : vector<1x256xf32>
    %82 = arith.addf %79, %81 : vector<1x256xf32>
    %83 = arith.mulf %16, %82 : vector<1x256xf32>
    %84 = arith.addf %73, %83 : vector<1x256xf32>
    %c0_49 = arith.constant 0 : index
    %c6_50 = arith.constant 6 : index
    %85 = vector.load %arg5[%c0_49, %c6_50] : memref<2x358xf32, #tpu.memory_space<vmem>>, vector<1x256xf32>
    %c1_51 = arith.constant 1 : index
    %c6_52 = arith.constant 6 : index
    %86 = vector.load %arg5[%c1_51, %c6_52] : memref<2x358xf32, #tpu.memory_space<vmem>>, vector<1x256xf32>
    %c6_53 = arith.constant 6 : index
    %87 = memref.load %arg1[%c6_53] : memref<98xf32, #tpu.memory_space<smem>>
    %c55 = arith.constant 55 : index
    %88 = memref.load %arg1[%c55] : memref<98xf32, #tpu.memory_space<smem>>
    %89 = vector.broadcast %87 : f32 to vector<1x256xf32>
    %90 = arith.mulf %85, %89 : vector<1x256xf32>
    %91 = vector.broadcast %88 : f32 to vector<1x256xf32>
    %92 = arith.mulf %86, %91 : vector<1x256xf32>
    %93 = arith.addf %90, %92 : vector<1x256xf32>
    %94 = arith.mulf %17, %93 : vector<1x256xf32>
    %95 = arith.addf %84, %94 : vector<1x256xf32>
    %c0_54 = arith.constant 0 : index
    %c16 = arith.constant 16 : index
    %96 = vector.load %arg5[%c0_54, %c16] : memref<2x358xf32, #tpu.memory_space<vmem>>, vector<1x256xf32>
    %c1_55 = arith.constant 1 : index
    %c16_56 = arith.constant 16 : index
    %97 = vector.load %arg5[%c1_55, %c16_56] : memref<2x358xf32, #tpu.memory_space<vmem>>, vector<1x256xf32>
    %c7 = arith.constant 7 : index
    %98 = memref.load %arg1[%c7] : memref<98xf32, #tpu.memory_space<smem>>
    %c56 = arith.constant 56 : index
    %99 = memref.load %arg1[%c56] : memref<98xf32, #tpu.memory_space<smem>>
    %100 = vector.broadcast %98 : f32 to vector<1x256xf32>
    %101 = arith.mulf %96, %100 : vector<1x256xf32>
    %102 = vector.broadcast %99 : f32 to vector<1x256xf32>
    %103 = arith.mulf %97, %102 : vector<1x256xf32>
    %104 = arith.addf %101, %103 : vector<1x256xf32>
    %105 = arith.mulf %11, %104 : vector<1x256xf32>
    %106 = arith.addf %95, %105 : vector<1x256xf32>
    %c0_57 = arith.constant 0 : index
    %c17 = arith.constant 17 : index
    %107 = vector.load %arg5[%c0_57, %c17] : memref<2x358xf32, #tpu.memory_space<vmem>>, vector<1x256xf32>
    %c1_58 = arith.constant 1 : index
    %c17_59 = arith.constant 17 : index
    %108 = vector.load %arg5[%c1_58, %c17_59] : memref<2x358xf32, #tpu.memory_space<vmem>>, vector<1x256xf32>
    %c8 = arith.constant 8 : index
    %109 = memref.load %arg1[%c8] : memref<98xf32, #tpu.memory_space<smem>>
    %c57 = arith.constant 57 : index
    %110 = memref.load %arg1[%c57] : memref<98xf32, #tpu.memory_space<smem>>
    %111 = vector.broadcast %109 : f32 to vector<1x256xf32>
    %112 = arith.mulf %107, %111 : vector<1x256xf32>
    %113 = vector.broadcast %110 : f32 to vector<1x256xf32>
    %114 = arith.mulf %108, %113 : vector<1x256xf32>
    %115 = arith.addf %112, %114 : vector<1x256xf32>
    %116 = arith.mulf %12, %115 : vector<1x256xf32>
    %117 = arith.addf %106, %116 : vector<1x256xf32>
    %c0_60 = arith.constant 0 : index
    %c18 = arith.constant 18 : index
    %118 = vector.load %arg5[%c0_60, %c18] : memref<2x358xf32, #tpu.memory_space<vmem>>, vector<1x256xf32>
    %c1_61 = arith.constant 1 : index
    %c18_62 = arith.constant 18 : index
    %119 = vector.load %arg5[%c1_61, %c18_62] : memref<2x358xf32, #tpu.memory_space<vmem>>, vector<1x256xf32>
    %c9 = arith.constant 9 : index
    %120 = memref.load %arg1[%c9] : memref<98xf32, #tpu.memory_space<smem>>
    %c58 = arith.constant 58 : index
    %121 = memref.load %arg1[%c58] : memref<98xf32, #tpu.memory_space<smem>>
    %122 = vector.broadcast %120 : f32 to vector<1x256xf32>
    %123 = arith.mulf %118, %122 : vector<1x256xf32>
    %124 = vector.broadcast %121 : f32 to vector<1x256xf32>
    %125 = arith.mulf %119, %124 : vector<1x256xf32>
    %126 = arith.addf %123, %125 : vector<1x256xf32>
    %127 = arith.mulf %13, %126 : vector<1x256xf32>
    %128 = arith.addf %117, %127 : vector<1x256xf32>
    %c0_63 = arith.constant 0 : index
    %c19 = arith.constant 19 : index
    %129 = vector.load %arg5[%c0_63, %c19] : memref<2x358xf32, #tpu.memory_space<vmem>>, vector<1x256xf32>
    %c1_64 = arith.constant 1 : index
    %c19_65 = arith.constant 19 : index
    %130 = vector.load %arg5[%c1_64, %c19_65] : memref<2x358xf32, #tpu.memory_space<vmem>>, vector<1x256xf32>
    %c10 = arith.constant 10 : index
    %131 = memref.load %arg1[%c10] : memref<98xf32, #tpu.memory_space<smem>>
    %c59 = arith.constant 59 : index
    %132 = memref.load %arg1[%c59] : memref<98xf32, #tpu.memory_space<smem>>
    %133 = vector.broadcast %131 : f32 to vector<1x256xf32>
    %134 = arith.mulf %129, %133 : vector<1x256xf32>
    %135 = vector.broadcast %132 : f32 to vector<1x256xf32>
    %136 = arith.mulf %130, %135 : vector<1x256xf32>
    %137 = arith.addf %134, %136 : vector<1x256xf32>
    %138 = arith.mulf %14, %137 : vector<1x256xf32>
    %139 = arith.addf %128, %138 : vector<1x256xf32>
    %c0_66 = arith.constant 0 : index
    %c20 = arith.constant 20 : index
    %140 = vector.load %arg5[%c0_66, %c20] : memref<2x358xf32, #tpu.memory_space<vmem>>, vector<1x256xf32>
    %c1_67 = arith.constant 1 : index
    %c20_68 = arith.constant 20 : index
    %141 = vector.load %arg5[%c1_67, %c20_68] : memref<2x358xf32, #tpu.memory_space<vmem>>, vector<1x256xf32>
    %c11 = arith.constant 11 : index
    %142 = memref.load %arg1[%c11] : memref<98xf32, #tpu.memory_space<smem>>
    %c60 = arith.constant 60 : index
    %143 = memref.load %arg1[%c60] : memref<98xf32, #tpu.memory_space<smem>>
    %144 = vector.broadcast %142 : f32 to vector<1x256xf32>
    %145 = arith.mulf %140, %144 : vector<1x256xf32>
    %146 = vector.broadcast %143 : f32 to vector<1x256xf32>
    %147 = arith.mulf %141, %146 : vector<1x256xf32>
    %148 = arith.addf %145, %147 : vector<1x256xf32>
    %149 = arith.mulf %15, %148 : vector<1x256xf32>
    %150 = arith.addf %139, %149 : vector<1x256xf32>
    %c0_69 = arith.constant 0 : index
    %c21 = arith.constant 21 : index
    %151 = vector.load %arg5[%c0_69, %c21] : memref<2x358xf32, #tpu.memory_space<vmem>>, vector<1x256xf32>
    %c1_70 = arith.constant 1 : index
    %c21_71 = arith.constant 21 : index
    %152 = vector.load %arg5[%c1_70, %c21_71] : memref<2x358xf32, #tpu.memory_space<vmem>>, vector<1x256xf32>
    %c12 = arith.constant 12 : index
    %153 = memref.load %arg1[%c12] : memref<98xf32, #tpu.memory_space<smem>>
    %c61 = arith.constant 61 : index
    %154 = memref.load %arg1[%c61] : memref<98xf32, #tpu.memory_space<smem>>
    %155 = vector.broadcast %153 : f32 to vector<1x256xf32>
    %156 = arith.mulf %151, %155 : vector<1x256xf32>
    %157 = vector.broadcast %154 : f32 to vector<1x256xf32>
    %158 = arith.mulf %152, %157 : vector<1x256xf32>
    %159 = arith.addf %156, %158 : vector<1x256xf32>
    %160 = arith.mulf %16, %159 : vector<1x256xf32>
    %161 = arith.addf %150, %160 : vector<1x256xf32>
    %c0_72 = arith.constant 0 : index
    %c22 = arith.constant 22 : index
    %162 = vector.load %arg5[%c0_72, %c22] : memref<2x358xf32, #tpu.memory_space<vmem>>, vector<1x256xf32>
    %c1_73 = arith.constant 1 : index
    %c22_74 = arith.constant 22 : index
    %163 = vector.load %arg5[%c1_73, %c22_74] : memref<2x358xf32, #tpu.memory_space<vmem>>, vector<1x256xf32>
    %c13 = arith.constant 13 : index
    %164 = memref.load %arg1[%c13] : memref<98xf32, #tpu.memory_space<smem>>
    %c62 = arith.constant 62 : index
    %165 = memref.load %arg1[%c62] : memref<98xf32, #tpu.memory_space<smem>>
    %166 = vector.broadcast %164 : f32 to vector<1x256xf32>
    %167 = arith.mulf %162, %166 : vector<1x256xf32>
    %168 = vector.broadcast %165 : f32 to vector<1x256xf32>
    %169 = arith.mulf %163, %168 : vector<1x256xf32>
    %170 = arith.addf %167, %169 : vector<1x256xf32>
    %171 = arith.mulf %17, %170 : vector<1x256xf32>
    %172 = arith.addf %161, %171 : vector<1x256xf32>
    %c0_75 = arith.constant 0 : index
    %c32 = arith.constant 32 : index
    %173 = vector.load %arg5[%c0_75, %c32] : memref<2x358xf32, #tpu.memory_space<vmem>>, vector<1x256xf32>
    %c1_76 = arith.constant 1 : index
    %c32_77 = arith.constant 32 : index
    %174 = vector.load %arg5[%c1_76, %c32_77] : memref<2x358xf32, #tpu.memory_space<vmem>>, vector<1x256xf32>
    %c14 = arith.constant 14 : index
    %175 = memref.load %arg1[%c14] : memref<98xf32, #tpu.memory_space<smem>>
    %c63 = arith.constant 63 : index
    %176 = memref.load %arg1[%c63] : memref<98xf32, #tpu.memory_space<smem>>
    %177 = vector.broadcast %175 : f32 to vector<1x256xf32>
    %178 = arith.mulf %173, %177 : vector<1x256xf32>
    %179 = vector.broadcast %176 : f32 to vector<1x256xf32>
    %180 = arith.mulf %174, %179 : vector<1x256xf32>
    %181 = arith.addf %178, %180 : vector<1x256xf32>
    %182 = arith.mulf %11, %181 : vector<1x256xf32>
    %183 = arith.addf %172, %182 : vector<1x256xf32>
    %c0_78 = arith.constant 0 : index
    %c33 = arith.constant 33 : index
    %184 = vector.load %arg5[%c0_78, %c33] : memref<2x358xf32, #tpu.memory_space<vmem>>, vector<1x256xf32>
    %c1_79 = arith.constant 1 : index
    %c33_80 = arith.constant 33 : index
    %185 = vector.load %arg5[%c1_79, %c33_80] : memref<2x358xf32, #tpu.memory_space<vmem>>, vector<1x256xf32>
    %c15 = arith.constant 15 : index
    %186 = memref.load %arg1[%c15] : memref<98xf32, #tpu.memory_space<smem>>
    %c64 = arith.constant 64 : index
    %187 = memref.load %arg1[%c64] : memref<98xf32, #tpu.memory_space<smem>>
    %188 = vector.broadcast %186 : f32 to vector<1x256xf32>
    %189 = arith.mulf %184, %188 : vector<1x256xf32>
    %190 = vector.broadcast %187 : f32 to vector<1x256xf32>
    %191 = arith.mulf %185, %190 : vector<1x256xf32>
    %192 = arith.addf %189, %191 : vector<1x256xf32>
    %193 = arith.mulf %12, %192 : vector<1x256xf32>
    %194 = arith.addf %183, %193 : vector<1x256xf32>
    %c0_81 = arith.constant 0 : index
    %c34 = arith.constant 34 : index
    %195 = vector.load %arg5[%c0_81, %c34] : memref<2x358xf32, #tpu.memory_space<vmem>>, vector<1x256xf32>
    %c1_82 = arith.constant 1 : index
    %c34_83 = arith.constant 34 : index
    %196 = vector.load %arg5[%c1_82, %c34_83] : memref<2x358xf32, #tpu.memory_space<vmem>>, vector<1x256xf32>
    %c16_84 = arith.constant 16 : index
    %197 = memref.load %arg1[%c16_84] : memref<98xf32, #tpu.memory_space<smem>>
    %c65 = arith.constant 65 : index
    %198 = memref.load %arg1[%c65] : memref<98xf32, #tpu.memory_space<smem>>
    %199 = vector.broadcast %197 : f32 to vector<1x256xf32>
    %200 = arith.mulf %195, %199 : vector<1x256xf32>
    %201 = vector.broadcast %198 : f32 to vector<1x256xf32>
    %202 = arith.mulf %196, %201 : vector<1x256xf32>
    %203 = arith.addf %200, %202 : vector<1x256xf32>
    %204 = arith.mulf %13, %203 : vector<1x256xf32>
    %205 = arith.addf %194, %204 : vector<1x256xf32>
    %c0_85 = arith.constant 0 : index
    %c35 = arith.constant 35 : index
    %206 = vector.load %arg5[%c0_85, %c35] : memref<2x358xf32, #tpu.memory_space<vmem>>, vector<1x256xf32>
    %c1_86 = arith.constant 1 : index
    %c35_87 = arith.constant 35 : index
    %207 = vector.load %arg5[%c1_86, %c35_87] : memref<2x358xf32, #tpu.memory_space<vmem>>, vector<1x256xf32>
    %c17_88 = arith.constant 17 : index
    %208 = memref.load %arg1[%c17_88] : memref<98xf32, #tpu.memory_space<smem>>
    %c66 = arith.constant 66 : index
    %209 = memref.load %arg1[%c66] : memref<98xf32, #tpu.memory_space<smem>>
    %210 = vector.broadcast %208 : f32 to vector<1x256xf32>
    %211 = arith.mulf %206, %210 : vector<1x256xf32>
    %212 = vector.broadcast %209 : f32 to vector<1x256xf32>
    %213 = arith.mulf %207, %212 : vector<1x256xf32>
    %214 = arith.addf %211, %213 : vector<1x256xf32>
    %215 = arith.mulf %14, %214 : vector<1x256xf32>
    %216 = arith.addf %205, %215 : vector<1x256xf32>
    %c0_89 = arith.constant 0 : index
    %c36 = arith.constant 36 : index
    %217 = vector.load %arg5[%c0_89, %c36] : memref<2x358xf32, #tpu.memory_space<vmem>>, vector<1x256xf32>
    %c1_90 = arith.constant 1 : index
    %c36_91 = arith.constant 36 : index
    %218 = vector.load %arg5[%c1_90, %c36_91] : memref<2x358xf32, #tpu.memory_space<vmem>>, vector<1x256xf32>
    %c18_92 = arith.constant 18 : index
    %219 = memref.load %arg1[%c18_92] : memref<98xf32, #tpu.memory_space<smem>>
    %c67 = arith.constant 67 : index
    %220 = memref.load %arg1[%c67] : memref<98xf32, #tpu.memory_space<smem>>
    %221 = vector.broadcast %219 : f32 to vector<1x256xf32>
    %222 = arith.mulf %217, %221 : vector<1x256xf32>
    %223 = vector.broadcast %220 : f32 to vector<1x256xf32>
    %224 = arith.mulf %218, %223 : vector<1x256xf32>
    %225 = arith.addf %222, %224 : vector<1x256xf32>
    %226 = arith.mulf %15, %225 : vector<1x256xf32>
    %227 = arith.addf %216, %226 : vector<1x256xf32>
    %c0_93 = arith.constant 0 : index
    %c37 = arith.constant 37 : index
    %228 = vector.load %arg5[%c0_93, %c37] : memref<2x358xf32, #tpu.memory_space<vmem>>, vector<1x256xf32>
    %c1_94 = arith.constant 1 : index
    %c37_95 = arith.constant 37 : index
    %229 = vector.load %arg5[%c1_94, %c37_95] : memref<2x358xf32, #tpu.memory_space<vmem>>, vector<1x256xf32>
    %c19_96 = arith.constant 19 : index
    %230 = memref.load %arg1[%c19_96] : memref<98xf32, #tpu.memory_space<smem>>
    %c68 = arith.constant 68 : index
    %231 = memref.load %arg1[%c68] : memref<98xf32, #tpu.memory_space<smem>>
    %232 = vector.broadcast %230 : f32 to vector<1x256xf32>
    %233 = arith.mulf %228, %232 : vector<1x256xf32>
    %234 = vector.broadcast %231 : f32 to vector<1x256xf32>
    %235 = arith.mulf %229, %234 : vector<1x256xf32>
    %236 = arith.addf %233, %235 : vector<1x256xf32>
    %237 = arith.mulf %16, %236 : vector<1x256xf32>
    %238 = arith.addf %227, %237 : vector<1x256xf32>
    %c0_97 = arith.constant 0 : index
    %c38 = arith.constant 38 : index
    %239 = vector.load %arg5[%c0_97, %c38] : memref<2x358xf32, #tpu.memory_space<vmem>>, vector<1x256xf32>
    %c1_98 = arith.constant 1 : index
    %c38_99 = arith.constant 38 : index
    %240 = vector.load %arg5[%c1_98, %c38_99] : memref<2x358xf32, #tpu.memory_space<vmem>>, vector<1x256xf32>
    %c20_100 = arith.constant 20 : index
    %241 = memref.load %arg1[%c20_100] : memref<98xf32, #tpu.memory_space<smem>>
    %c69 = arith.constant 69 : index
    %242 = memref.load %arg1[%c69] : memref<98xf32, #tpu.memory_space<smem>>
    %243 = vector.broadcast %241 : f32 to vector<1x256xf32>
    %244 = arith.mulf %239, %243 : vector<1x256xf32>
    %245 = vector.broadcast %242 : f32 to vector<1x256xf32>
    %246 = arith.mulf %240, %245 : vector<1x256xf32>
    %247 = arith.addf %244, %246 : vector<1x256xf32>
    %248 = arith.mulf %17, %247 : vector<1x256xf32>
    %249 = arith.addf %238, %248 : vector<1x256xf32>
    %c0_101 = arith.constant 0 : index
    %c48 = arith.constant 48 : index
    %250 = vector.load %arg5[%c0_101, %c48] : memref<2x358xf32, #tpu.memory_space<vmem>>, vector<1x256xf32>
    %c1_102 = arith.constant 1 : index
    %c48_103 = arith.constant 48 : index
    %251 = vector.load %arg5[%c1_102, %c48_103] : memref<2x358xf32, #tpu.memory_space<vmem>>, vector<1x256xf32>
    %c21_104 = arith.constant 21 : index
    %252 = memref.load %arg1[%c21_104] : memref<98xf32, #tpu.memory_space<smem>>
    %c70 = arith.constant 70 : index
    %253 = memref.load %arg1[%c70] : memref<98xf32, #tpu.memory_space<smem>>
    %254 = vector.broadcast %252 : f32 to vector<1x256xf32>
    %255 = arith.mulf %250, %254 : vector<1x256xf32>
    %256 = vector.broadcast %253 : f32 to vector<1x256xf32>
    %257 = arith.mulf %251, %256 : vector<1x256xf32>
    %258 = arith.addf %255, %257 : vector<1x256xf32>
    %259 = arith.mulf %11, %258 : vector<1x256xf32>
    %260 = arith.addf %249, %259 : vector<1x256xf32>
    %c0_105 = arith.constant 0 : index
    %c49_106 = arith.constant 49 : index
    %261 = vector.load %arg5[%c0_105, %c49_106] : memref<2x358xf32, #tpu.memory_space<vmem>>, vector<1x256xf32>
    %c1_107 = arith.constant 1 : index
    %c49_108 = arith.constant 49 : index
    %262 = vector.load %arg5[%c1_107, %c49_108] : memref<2x358xf32, #tpu.memory_space<vmem>>, vector<1x256xf32>
    %c22_109 = arith.constant 22 : index
    %263 = memref.load %arg1[%c22_109] : memref<98xf32, #tpu.memory_space<smem>>
    %c71 = arith.constant 71 : index
    %264 = memref.load %arg1[%c71] : memref<98xf32, #tpu.memory_space<smem>>
    %265 = vector.broadcast %263 : f32 to vector<1x256xf32>
    %266 = arith.mulf %261, %265 : vector<1x256xf32>
    %267 = vector.broadcast %264 : f32 to vector<1x256xf32>
    %268 = arith.mulf %262, %267 : vector<1x256xf32>
    %269 = arith.addf %266, %268 : vector<1x256xf32>
    %270 = arith.mulf %12, %269 : vector<1x256xf32>
    %271 = arith.addf %260, %270 : vector<1x256xf32>
    %c0_110 = arith.constant 0 : index
    %c50_111 = arith.constant 50 : index
    %272 = vector.load %arg5[%c0_110, %c50_111] : memref<2x358xf32, #tpu.memory_space<vmem>>, vector<1x256xf32>
    %c1_112 = arith.constant 1 : index
    %c50_113 = arith.constant 50 : index
    %273 = vector.load %arg5[%c1_112, %c50_113] : memref<2x358xf32, #tpu.memory_space<vmem>>, vector<1x256xf32>
    %c23 = arith.constant 23 : index
    %274 = memref.load %arg1[%c23] : memref<98xf32, #tpu.memory_space<smem>>
    %c72 = arith.constant 72 : index
    %275 = memref.load %arg1[%c72] : memref<98xf32, #tpu.memory_space<smem>>
    %276 = vector.broadcast %274 : f32 to vector<1x256xf32>
    %277 = arith.mulf %272, %276 : vector<1x256xf32>
    %278 = vector.broadcast %275 : f32 to vector<1x256xf32>
    %279 = arith.mulf %273, %278 : vector<1x256xf32>
    %280 = arith.addf %277, %279 : vector<1x256xf32>
    %281 = arith.mulf %13, %280 : vector<1x256xf32>
    %282 = arith.addf %271, %281 : vector<1x256xf32>
    %c0_114 = arith.constant 0 : index
    %c51_115 = arith.constant 51 : index
    %283 = vector.load %arg5[%c0_114, %c51_115] : memref<2x358xf32, #tpu.memory_space<vmem>>, vector<1x256xf32>
    %c1_116 = arith.constant 1 : index
    %c51_117 = arith.constant 51 : index
    %284 = vector.load %arg5[%c1_116, %c51_117] : memref<2x358xf32, #tpu.memory_space<vmem>>, vector<1x256xf32>
    %c24 = arith.constant 24 : index
    %285 = memref.load %arg1[%c24] : memref<98xf32, #tpu.memory_space<smem>>
    %c73 = arith.constant 73 : index
    %286 = memref.load %arg1[%c73] : memref<98xf32, #tpu.memory_space<smem>>
    %287 = vector.broadcast %285 : f32 to vector<1x256xf32>
    %288 = arith.mulf %283, %287 : vector<1x256xf32>
    %289 = vector.broadcast %286 : f32 to vector<1x256xf32>
    %290 = arith.mulf %284, %289 : vector<1x256xf32>
    %291 = arith.addf %288, %290 : vector<1x256xf32>
    %292 = arith.mulf %14, %291 : vector<1x256xf32>
    %293 = arith.addf %282, %292 : vector<1x256xf32>
    %c0_118 = arith.constant 0 : index
    %c52_119 = arith.constant 52 : index
    %294 = vector.load %arg5[%c0_118, %c52_119] : memref<2x358xf32, #tpu.memory_space<vmem>>, vector<1x256xf32>
    %c1_120 = arith.constant 1 : index
    %c52_121 = arith.constant 52 : index
    %295 = vector.load %arg5[%c1_120, %c52_121] : memref<2x358xf32, #tpu.memory_space<vmem>>, vector<1x256xf32>
    %c25 = arith.constant 25 : index
    %296 = memref.load %arg1[%c25] : memref<98xf32, #tpu.memory_space<smem>>
    %c74 = arith.constant 74 : index
    %297 = memref.load %arg1[%c74] : memref<98xf32, #tpu.memory_space<smem>>
    %298 = vector.broadcast %296 : f32 to vector<1x256xf32>
    %299 = arith.mulf %294, %298 : vector<1x256xf32>
    %300 = vector.broadcast %297 : f32 to vector<1x256xf32>
    %301 = arith.mulf %295, %300 : vector<1x256xf32>
    %302 = arith.addf %299, %301 : vector<1x256xf32>
    %303 = arith.mulf %15, %302 : vector<1x256xf32>
    %304 = arith.addf %293, %303 : vector<1x256xf32>
    %c0_122 = arith.constant 0 : index
    %c53_123 = arith.constant 53 : index
    %305 = vector.load %arg5[%c0_122, %c53_123] : memref<2x358xf32, #tpu.memory_space<vmem>>, vector<1x256xf32>
    %c1_124 = arith.constant 1 : index
    %c53_125 = arith.constant 53 : index
    %306 = vector.load %arg5[%c1_124, %c53_125] : memref<2x358xf32, #tpu.memory_space<vmem>>, vector<1x256xf32>
    %c26 = arith.constant 26 : index
    %307 = memref.load %arg1[%c26] : memref<98xf32, #tpu.memory_space<smem>>
    %c75 = arith.constant 75 : index
    %308 = memref.load %arg1[%c75] : memref<98xf32, #tpu.memory_space<smem>>
    %309 = vector.broadcast %307 : f32 to vector<1x256xf32>
    %310 = arith.mulf %305, %309 : vector<1x256xf32>
    %311 = vector.broadcast %308 : f32 to vector<1x256xf32>
    %312 = arith.mulf %306, %311 : vector<1x256xf32>
    %313 = arith.addf %310, %312 : vector<1x256xf32>
    %314 = arith.mulf %16, %313 : vector<1x256xf32>
    %315 = arith.addf %304, %314 : vector<1x256xf32>
    %c0_126 = arith.constant 0 : index
    %c54_127 = arith.constant 54 : index
    %316 = vector.load %arg5[%c0_126, %c54_127] : memref<2x358xf32, #tpu.memory_space<vmem>>, vector<1x256xf32>
    %c1_128 = arith.constant 1 : index
    %c54_129 = arith.constant 54 : index
    %317 = vector.load %arg5[%c1_128, %c54_129] : memref<2x358xf32, #tpu.memory_space<vmem>>, vector<1x256xf32>
    %c27 = arith.constant 27 : index
    %318 = memref.load %arg1[%c27] : memref<98xf32, #tpu.memory_space<smem>>
    %c76 = arith.constant 76 : index
    %319 = memref.load %arg1[%c76] : memref<98xf32, #tpu.memory_space<smem>>
    %320 = vector.broadcast %318 : f32 to vector<1x256xf32>
    %321 = arith.mulf %316, %320 : vector<1x256xf32>
    %322 = vector.broadcast %319 : f32 to vector<1x256xf32>
    %323 = arith.mulf %317, %322 : vector<1x256xf32>
    %324 = arith.addf %321, %323 : vector<1x256xf32>
    %325 = arith.mulf %17, %324 : vector<1x256xf32>
    %326 = arith.addf %315, %325 : vector<1x256xf32>
    %c0_130 = arith.constant 0 : index
    %c64_131 = arith.constant 64 : index
    %327 = vector.load %arg5[%c0_130, %c64_131] : memref<2x358xf32, #tpu.memory_space<vmem>>, vector<1x256xf32>
    %c1_132 = arith.constant 1 : index
    %c64_133 = arith.constant 64 : index
    %328 = vector.load %arg5[%c1_132, %c64_133] : memref<2x358xf32, #tpu.memory_space<vmem>>, vector<1x256xf32>
    %c28 = arith.constant 28 : index
    %329 = memref.load %arg1[%c28] : memref<98xf32, #tpu.memory_space<smem>>
    %c77 = arith.constant 77 : index
    %330 = memref.load %arg1[%c77] : memref<98xf32, #tpu.memory_space<smem>>
    %331 = vector.broadcast %329 : f32 to vector<1x256xf32>
    %332 = arith.mulf %327, %331 : vector<1x256xf32>
    %333 = vector.broadcast %330 : f32 to vector<1x256xf32>
    %334 = arith.mulf %328, %333 : vector<1x256xf32>
    %335 = arith.addf %332, %334 : vector<1x256xf32>
    %336 = arith.mulf %11, %335 : vector<1x256xf32>
    %337 = arith.addf %326, %336 : vector<1x256xf32>
    %c0_134 = arith.constant 0 : index
    %c65_135 = arith.constant 65 : index
    %338 = vector.load %arg5[%c0_134, %c65_135] : memref<2x358xf32, #tpu.memory_space<vmem>>, vector<1x256xf32>
    %c1_136 = arith.constant 1 : index
    %c65_137 = arith.constant 65 : index
    %339 = vector.load %arg5[%c1_136, %c65_137] : memref<2x358xf32, #tpu.memory_space<vmem>>, vector<1x256xf32>
    %c29 = arith.constant 29 : index
    %340 = memref.load %arg1[%c29] : memref<98xf32, #tpu.memory_space<smem>>
    %c78 = arith.constant 78 : index
    %341 = memref.load %arg1[%c78] : memref<98xf32, #tpu.memory_space<smem>>
    %342 = vector.broadcast %340 : f32 to vector<1x256xf32>
    %343 = arith.mulf %338, %342 : vector<1x256xf32>
    %344 = vector.broadcast %341 : f32 to vector<1x256xf32>
    %345 = arith.mulf %339, %344 : vector<1x256xf32>
    %346 = arith.addf %343, %345 : vector<1x256xf32>
    %347 = arith.mulf %12, %346 : vector<1x256xf32>
    %348 = arith.addf %337, %347 : vector<1x256xf32>
    %c0_138 = arith.constant 0 : index
    %c66_139 = arith.constant 66 : index
    %349 = vector.load %arg5[%c0_138, %c66_139] : memref<2x358xf32, #tpu.memory_space<vmem>>, vector<1x256xf32>
    %c1_140 = arith.constant 1 : index
    %c66_141 = arith.constant 66 : index
    %350 = vector.load %arg5[%c1_140, %c66_141] : memref<2x358xf32, #tpu.memory_space<vmem>>, vector<1x256xf32>
    %c30 = arith.constant 30 : index
    %351 = memref.load %arg1[%c30] : memref<98xf32, #tpu.memory_space<smem>>
    %c79 = arith.constant 79 : index
    %352 = memref.load %arg1[%c79] : memref<98xf32, #tpu.memory_space<smem>>
    %353 = vector.broadcast %351 : f32 to vector<1x256xf32>
    %354 = arith.mulf %349, %353 : vector<1x256xf32>
    %355 = vector.broadcast %352 : f32 to vector<1x256xf32>
    %356 = arith.mulf %350, %355 : vector<1x256xf32>
    %357 = arith.addf %354, %356 : vector<1x256xf32>
    %358 = arith.mulf %13, %357 : vector<1x256xf32>
    %359 = arith.addf %348, %358 : vector<1x256xf32>
    %c0_142 = arith.constant 0 : index
    %c67_143 = arith.constant 67 : index
    %360 = vector.load %arg5[%c0_142, %c67_143] : memref<2x358xf32, #tpu.memory_space<vmem>>, vector<1x256xf32>
    %c1_144 = arith.constant 1 : index
    %c67_145 = arith.constant 67 : index
    %361 = vector.load %arg5[%c1_144, %c67_145] : memref<2x358xf32, #tpu.memory_space<vmem>>, vector<1x256xf32>
    %c31 = arith.constant 31 : index
    %362 = memref.load %arg1[%c31] : memref<98xf32, #tpu.memory_space<smem>>
    %c80 = arith.constant 80 : index
    %363 = memref.load %arg1[%c80] : memref<98xf32, #tpu.memory_space<smem>>
    %364 = vector.broadcast %362 : f32 to vector<1x256xf32>
    %365 = arith.mulf %360, %364 : vector<1x256xf32>
    %366 = vector.broadcast %363 : f32 to vector<1x256xf32>
    %367 = arith.mulf %361, %366 : vector<1x256xf32>
    %368 = arith.addf %365, %367 : vector<1x256xf32>
    %369 = arith.mulf %14, %368 : vector<1x256xf32>
    %370 = arith.addf %359, %369 : vector<1x256xf32>
    %c0_146 = arith.constant 0 : index
    %c68_147 = arith.constant 68 : index
    %371 = vector.load %arg5[%c0_146, %c68_147] : memref<2x358xf32, #tpu.memory_space<vmem>>, vector<1x256xf32>
    %c1_148 = arith.constant 1 : index
    %c68_149 = arith.constant 68 : index
    %372 = vector.load %arg5[%c1_148, %c68_149] : memref<2x358xf32, #tpu.memory_space<vmem>>, vector<1x256xf32>
    %c32_150 = arith.constant 32 : index
    %373 = memref.load %arg1[%c32_150] : memref<98xf32, #tpu.memory_space<smem>>
    %c81 = arith.constant 81 : index
    %374 = memref.load %arg1[%c81] : memref<98xf32, #tpu.memory_space<smem>>
    %375 = vector.broadcast %373 : f32 to vector<1x256xf32>
    %376 = arith.mulf %371, %375 : vector<1x256xf32>
    %377 = vector.broadcast %374 : f32 to vector<1x256xf32>
    %378 = arith.mulf %372, %377 : vector<1x256xf32>
    %379 = arith.addf %376, %378 : vector<1x256xf32>
    %380 = arith.mulf %15, %379 : vector<1x256xf32>
    %381 = arith.addf %370, %380 : vector<1x256xf32>
    %c0_151 = arith.constant 0 : index
    %c69_152 = arith.constant 69 : index
    %382 = vector.load %arg5[%c0_151, %c69_152] : memref<2x358xf32, #tpu.memory_space<vmem>>, vector<1x256xf32>
    %c1_153 = arith.constant 1 : index
    %c69_154 = arith.constant 69 : index
    %383 = vector.load %arg5[%c1_153, %c69_154] : memref<2x358xf32, #tpu.memory_space<vmem>>, vector<1x256xf32>
    %c33_155 = arith.constant 33 : index
    %384 = memref.load %arg1[%c33_155] : memref<98xf32, #tpu.memory_space<smem>>
    %c82 = arith.constant 82 : index
    %385 = memref.load %arg1[%c82] : memref<98xf32, #tpu.memory_space<smem>>
    %386 = vector.broadcast %384 : f32 to vector<1x256xf32>
    %387 = arith.mulf %382, %386 : vector<1x256xf32>
    %388 = vector.broadcast %385 : f32 to vector<1x256xf32>
    %389 = arith.mulf %383, %388 : vector<1x256xf32>
    %390 = arith.addf %387, %389 : vector<1x256xf32>
    %391 = arith.mulf %16, %390 : vector<1x256xf32>
    %392 = arith.addf %381, %391 : vector<1x256xf32>
    %c0_156 = arith.constant 0 : index
    %c70_157 = arith.constant 70 : index
    %393 = vector.load %arg5[%c0_156, %c70_157] : memref<2x358xf32, #tpu.memory_space<vmem>>, vector<1x256xf32>
    %c1_158 = arith.constant 1 : index
    %c70_159 = arith.constant 70 : index
    %394 = vector.load %arg5[%c1_158, %c70_159] : memref<2x358xf32, #tpu.memory_space<vmem>>, vector<1x256xf32>
    %c34_160 = arith.constant 34 : index
    %395 = memref.load %arg1[%c34_160] : memref<98xf32, #tpu.memory_space<smem>>
    %c83 = arith.constant 83 : index
    %396 = memref.load %arg1[%c83] : memref<98xf32, #tpu.memory_space<smem>>
    %397 = vector.broadcast %395 : f32 to vector<1x256xf32>
    %398 = arith.mulf %393, %397 : vector<1x256xf32>
    %399 = vector.broadcast %396 : f32 to vector<1x256xf32>
    %400 = arith.mulf %394, %399 : vector<1x256xf32>
    %401 = arith.addf %398, %400 : vector<1x256xf32>
    %402 = arith.mulf %17, %401 : vector<1x256xf32>
    %403 = arith.addf %392, %402 : vector<1x256xf32>
    %c0_161 = arith.constant 0 : index
    %c80_162 = arith.constant 80 : index
    %404 = vector.load %arg5[%c0_161, %c80_162] : memref<2x358xf32, #tpu.memory_space<vmem>>, vector<1x256xf32>
    %c1_163 = arith.constant 1 : index
    %c80_164 = arith.constant 80 : index
    %405 = vector.load %arg5[%c1_163, %c80_164] : memref<2x358xf32, #tpu.memory_space<vmem>>, vector<1x256xf32>
    %c35_165 = arith.constant 35 : index
    %406 = memref.load %arg1[%c35_165] : memref<98xf32, #tpu.memory_space<smem>>
    %c84 = arith.constant 84 : index
    %407 = memref.load %arg1[%c84] : memref<98xf32, #tpu.memory_space<smem>>
    %408 = vector.broadcast %406 : f32 to vector<1x256xf32>
    %409 = arith.mulf %404, %408 : vector<1x256xf32>
    %410 = vector.broadcast %407 : f32 to vector<1x256xf32>
    %411 = arith.mulf %405, %410 : vector<1x256xf32>
    %412 = arith.addf %409, %411 : vector<1x256xf32>
    %413 = arith.mulf %11, %412 : vector<1x256xf32>
    %414 = arith.addf %403, %413 : vector<1x256xf32>
    %c0_166 = arith.constant 0 : index
    %c81_167 = arith.constant 81 : index
    %415 = vector.load %arg5[%c0_166, %c81_167] : memref<2x358xf32, #tpu.memory_space<vmem>>, vector<1x256xf32>
    %c1_168 = arith.constant 1 : index
    %c81_169 = arith.constant 81 : index
    %416 = vector.load %arg5[%c1_168, %c81_169] : memref<2x358xf32, #tpu.memory_space<vmem>>, vector<1x256xf32>
    %c36_170 = arith.constant 36 : index
    %417 = memref.load %arg1[%c36_170] : memref<98xf32, #tpu.memory_space<smem>>
    %c85 = arith.constant 85 : index
    %418 = memref.load %arg1[%c85] : memref<98xf32, #tpu.memory_space<smem>>
    %419 = vector.broadcast %417 : f32 to vector<1x256xf32>
    %420 = arith.mulf %415, %419 : vector<1x256xf32>
    %421 = vector.broadcast %418 : f32 to vector<1x256xf32>
    %422 = arith.mulf %416, %421 : vector<1x256xf32>
    %423 = arith.addf %420, %422 : vector<1x256xf32>
    %424 = arith.mulf %12, %423 : vector<1x256xf32>
    %425 = arith.addf %414, %424 : vector<1x256xf32>
    %c0_171 = arith.constant 0 : index
    %c82_172 = arith.constant 82 : index
    %426 = vector.load %arg5[%c0_171, %c82_172] : memref<2x358xf32, #tpu.memory_space<vmem>>, vector<1x256xf32>
    %c1_173 = arith.constant 1 : index
    %c82_174 = arith.constant 82 : index
    %427 = vector.load %arg5[%c1_173, %c82_174] : memref<2x358xf32, #tpu.memory_space<vmem>>, vector<1x256xf32>
    %c37_175 = arith.constant 37 : index
    %428 = memref.load %arg1[%c37_175] : memref<98xf32, #tpu.memory_space<smem>>
    %c86 = arith.constant 86 : index
    %429 = memref.load %arg1[%c86] : memref<98xf32, #tpu.memory_space<smem>>
    %430 = vector.broadcast %428 : f32 to vector<1x256xf32>
    %431 = arith.mulf %426, %430 : vector<1x256xf32>
    %432 = vector.broadcast %429 : f32 to vector<1x256xf32>
    %433 = arith.mulf %427, %432 : vector<1x256xf32>
    %434 = arith.addf %431, %433 : vector<1x256xf32>
    %435 = arith.mulf %13, %434 : vector<1x256xf32>
    %436 = arith.addf %425, %435 : vector<1x256xf32>
    %c0_176 = arith.constant 0 : index
    %c83_177 = arith.constant 83 : index
    %437 = vector.load %arg5[%c0_176, %c83_177] : memref<2x358xf32, #tpu.memory_space<vmem>>, vector<1x256xf32>
    %c1_178 = arith.constant 1 : index
    %c83_179 = arith.constant 83 : index
    %438 = vector.load %arg5[%c1_178, %c83_179] : memref<2x358xf32, #tpu.memory_space<vmem>>, vector<1x256xf32>
    %c38_180 = arith.constant 38 : index
    %439 = memref.load %arg1[%c38_180] : memref<98xf32, #tpu.memory_space<smem>>
    %c87 = arith.constant 87 : index
    %440 = memref.load %arg1[%c87] : memref<98xf32, #tpu.memory_space<smem>>
    %441 = vector.broadcast %439 : f32 to vector<1x256xf32>
    %442 = arith.mulf %437, %441 : vector<1x256xf32>
    %443 = vector.broadcast %440 : f32 to vector<1x256xf32>
    %444 = arith.mulf %438, %443 : vector<1x256xf32>
    %445 = arith.addf %442, %444 : vector<1x256xf32>
    %446 = arith.mulf %14, %445 : vector<1x256xf32>
    %447 = arith.addf %436, %446 : vector<1x256xf32>
    %c0_181 = arith.constant 0 : index
    %c84_182 = arith.constant 84 : index
    %448 = vector.load %arg5[%c0_181, %c84_182] : memref<2x358xf32, #tpu.memory_space<vmem>>, vector<1x256xf32>
    %c1_183 = arith.constant 1 : index
    %c84_184 = arith.constant 84 : index
    %449 = vector.load %arg5[%c1_183, %c84_184] : memref<2x358xf32, #tpu.memory_space<vmem>>, vector<1x256xf32>
    %c39 = arith.constant 39 : index
    %450 = memref.load %arg1[%c39] : memref<98xf32, #tpu.memory_space<smem>>
    %c88 = arith.constant 88 : index
    %451 = memref.load %arg1[%c88] : memref<98xf32, #tpu.memory_space<smem>>
    %452 = vector.broadcast %450 : f32 to vector<1x256xf32>
    %453 = arith.mulf %448, %452 : vector<1x256xf32>
    %454 = vector.broadcast %451 : f32 to vector<1x256xf32>
    %455 = arith.mulf %449, %454 : vector<1x256xf32>
    %456 = arith.addf %453, %455 : vector<1x256xf32>
    %457 = arith.mulf %15, %456 : vector<1x256xf32>
    %458 = arith.addf %447, %457 : vector<1x256xf32>
    %c0_185 = arith.constant 0 : index
    %c85_186 = arith.constant 85 : index
    %459 = vector.load %arg5[%c0_185, %c85_186] : memref<2x358xf32, #tpu.memory_space<vmem>>, vector<1x256xf32>
    %c1_187 = arith.constant 1 : index
    %c85_188 = arith.constant 85 : index
    %460 = vector.load %arg5[%c1_187, %c85_188] : memref<2x358xf32, #tpu.memory_space<vmem>>, vector<1x256xf32>
    %c40 = arith.constant 40 : index
    %461 = memref.load %arg1[%c40] : memref<98xf32, #tpu.memory_space<smem>>
    %c89 = arith.constant 89 : index
    %462 = memref.load %arg1[%c89] : memref<98xf32, #tpu.memory_space<smem>>
    %463 = vector.broadcast %461 : f32 to vector<1x256xf32>
    %464 = arith.mulf %459, %463 : vector<1x256xf32>
    %465 = vector.broadcast %462 : f32 to vector<1x256xf32>
    %466 = arith.mulf %460, %465 : vector<1x256xf32>
    %467 = arith.addf %464, %466 : vector<1x256xf32>
    %468 = arith.mulf %16, %467 : vector<1x256xf32>
    %469 = arith.addf %458, %468 : vector<1x256xf32>
    %c0_189 = arith.constant 0 : index
    %c86_190 = arith.constant 86 : index
    %470 = vector.load %arg5[%c0_189, %c86_190] : memref<2x358xf32, #tpu.memory_space<vmem>>, vector<1x256xf32>
    %c1_191 = arith.constant 1 : index
    %c86_192 = arith.constant 86 : index
    %471 = vector.load %arg5[%c1_191, %c86_192] : memref<2x358xf32, #tpu.memory_space<vmem>>, vector<1x256xf32>
    %c41 = arith.constant 41 : index
    %472 = memref.load %arg1[%c41] : memref<98xf32, #tpu.memory_space<smem>>
    %c90 = arith.constant 90 : index
    %473 = memref.load %arg1[%c90] : memref<98xf32, #tpu.memory_space<smem>>
    %474 = vector.broadcast %472 : f32 to vector<1x256xf32>
    %475 = arith.mulf %470, %474 : vector<1x256xf32>
    %476 = vector.broadcast %473 : f32 to vector<1x256xf32>
    %477 = arith.mulf %471, %476 : vector<1x256xf32>
    %478 = arith.addf %475, %477 : vector<1x256xf32>
    %479 = arith.mulf %17, %478 : vector<1x256xf32>
    %480 = arith.addf %469, %479 : vector<1x256xf32>
    %c0_193 = arith.constant 0 : index
    %c96 = arith.constant 96 : index
    %481 = vector.load %arg5[%c0_193, %c96] : memref<2x358xf32, #tpu.memory_space<vmem>>, vector<1x256xf32>
    %c1_194 = arith.constant 1 : index
    %c96_195 = arith.constant 96 : index
    %482 = vector.load %arg5[%c1_194, %c96_195] : memref<2x358xf32, #tpu.memory_space<vmem>>, vector<1x256xf32>
    %c42 = arith.constant 42 : index
    %483 = memref.load %arg1[%c42] : memref<98xf32, #tpu.memory_space<smem>>
    %c91 = arith.constant 91 : index
    %484 = memref.load %arg1[%c91] : memref<98xf32, #tpu.memory_space<smem>>
    %485 = vector.broadcast %483 : f32 to vector<1x256xf32>
    %486 = arith.mulf %481, %485 : vector<1x256xf32>
    %487 = vector.broadcast %484 : f32 to vector<1x256xf32>
    %488 = arith.mulf %482, %487 : vector<1x256xf32>
    %489 = arith.addf %486, %488 : vector<1x256xf32>
    %490 = arith.mulf %11, %489 : vector<1x256xf32>
    %491 = arith.addf %480, %490 : vector<1x256xf32>
    %c0_196 = arith.constant 0 : index
    %c97 = arith.constant 97 : index
    %492 = vector.load %arg5[%c0_196, %c97] : memref<2x358xf32, #tpu.memory_space<vmem>>, vector<1x256xf32>
    %c1_197 = arith.constant 1 : index
    %c97_198 = arith.constant 97 : index
    %493 = vector.load %arg5[%c1_197, %c97_198] : memref<2x358xf32, #tpu.memory_space<vmem>>, vector<1x256xf32>
    %c43 = arith.constant 43 : index
    %494 = memref.load %arg1[%c43] : memref<98xf32, #tpu.memory_space<smem>>
    %c92 = arith.constant 92 : index
    %495 = memref.load %arg1[%c92] : memref<98xf32, #tpu.memory_space<smem>>
    %496 = vector.broadcast %494 : f32 to vector<1x256xf32>
    %497 = arith.mulf %492, %496 : vector<1x256xf32>
    %498 = vector.broadcast %495 : f32 to vector<1x256xf32>
    %499 = arith.mulf %493, %498 : vector<1x256xf32>
    %500 = arith.addf %497, %499 : vector<1x256xf32>
    %501 = arith.mulf %12, %500 : vector<1x256xf32>
    %502 = arith.addf %491, %501 : vector<1x256xf32>
    %c0_199 = arith.constant 0 : index
    %c98 = arith.constant 98 : index
    %503 = vector.load %arg5[%c0_199, %c98] : memref<2x358xf32, #tpu.memory_space<vmem>>, vector<1x256xf32>
    %c1_200 = arith.constant 1 : index
    %c98_201 = arith.constant 98 : index
    %504 = vector.load %arg5[%c1_200, %c98_201] : memref<2x358xf32, #tpu.memory_space<vmem>>, vector<1x256xf32>
    %c44 = arith.constant 44 : index
    %505 = memref.load %arg1[%c44] : memref<98xf32, #tpu.memory_space<smem>>
    %c93 = arith.constant 93 : index
    %506 = memref.load %arg1[%c93] : memref<98xf32, #tpu.memory_space<smem>>
    %507 = vector.broadcast %505 : f32 to vector<1x256xf32>
    %508 = arith.mulf %503, %507 : vector<1x256xf32>
    %509 = vector.broadcast %506 : f32 to vector<1x256xf32>
    %510 = arith.mulf %504, %509 : vector<1x256xf32>
    %511 = arith.addf %508, %510 : vector<1x256xf32>
    %512 = arith.mulf %13, %511 : vector<1x256xf32>
    %513 = arith.addf %502, %512 : vector<1x256xf32>
    %c0_202 = arith.constant 0 : index
    %c99 = arith.constant 99 : index
    %514 = vector.load %arg5[%c0_202, %c99] : memref<2x358xf32, #tpu.memory_space<vmem>>, vector<1x256xf32>
    %c1_203 = arith.constant 1 : index
    %c99_204 = arith.constant 99 : index
    %515 = vector.load %arg5[%c1_203, %c99_204] : memref<2x358xf32, #tpu.memory_space<vmem>>, vector<1x256xf32>
    %c45 = arith.constant 45 : index
    %516 = memref.load %arg1[%c45] : memref<98xf32, #tpu.memory_space<smem>>
    %c94 = arith.constant 94 : index
    %517 = memref.load %arg1[%c94] : memref<98xf32, #tpu.memory_space<smem>>
    %518 = vector.broadcast %516 : f32 to vector<1x256xf32>
    %519 = arith.mulf %514, %518 : vector<1x256xf32>
    %520 = vector.broadcast %517 : f32 to vector<1x256xf32>
    %521 = arith.mulf %515, %520 : vector<1x256xf32>
    %522 = arith.addf %519, %521 : vector<1x256xf32>
    %523 = arith.mulf %14, %522 : vector<1x256xf32>
    %524 = arith.addf %513, %523 : vector<1x256xf32>
    %c0_205 = arith.constant 0 : index
    %c100 = arith.constant 100 : index
    %525 = vector.load %arg5[%c0_205, %c100] : memref<2x358xf32, #tpu.memory_space<vmem>>, vector<1x256xf32>
    %c1_206 = arith.constant 1 : index
    %c100_207 = arith.constant 100 : index
    %526 = vector.load %arg5[%c1_206, %c100_207] : memref<2x358xf32, #tpu.memory_space<vmem>>, vector<1x256xf32>
    %c46 = arith.constant 46 : index
    %527 = memref.load %arg1[%c46] : memref<98xf32, #tpu.memory_space<smem>>
    %c95 = arith.constant 95 : index
    %528 = memref.load %arg1[%c95] : memref<98xf32, #tpu.memory_space<smem>>
    %529 = vector.broadcast %527 : f32 to vector<1x256xf32>
    %530 = arith.mulf %525, %529 : vector<1x256xf32>
    %531 = vector.broadcast %528 : f32 to vector<1x256xf32>
    %532 = arith.mulf %526, %531 : vector<1x256xf32>
    %533 = arith.addf %530, %532 : vector<1x256xf32>
    %534 = arith.mulf %15, %533 : vector<1x256xf32>
    %535 = arith.addf %524, %534 : vector<1x256xf32>
    %c0_208 = arith.constant 0 : index
    %c101 = arith.constant 101 : index
    %536 = vector.load %arg5[%c0_208, %c101] : memref<2x358xf32, #tpu.memory_space<vmem>>, vector<1x256xf32>
    %c1_209 = arith.constant 1 : index
    %c101_210 = arith.constant 101 : index
    %537 = vector.load %arg5[%c1_209, %c101_210] : memref<2x358xf32, #tpu.memory_space<vmem>>, vector<1x256xf32>
    %c47 = arith.constant 47 : index
    %538 = memref.load %arg1[%c47] : memref<98xf32, #tpu.memory_space<smem>>
    %c96_211 = arith.constant 96 : index
    %539 = memref.load %arg1[%c96_211] : memref<98xf32, #tpu.memory_space<smem>>
    %540 = vector.broadcast %538 : f32 to vector<1x256xf32>
    %541 = arith.mulf %536, %540 : vector<1x256xf32>
    %542 = vector.broadcast %539 : f32 to vector<1x256xf32>
    %543 = arith.mulf %537, %542 : vector<1x256xf32>
    %544 = arith.addf %541, %543 : vector<1x256xf32>
    %545 = arith.mulf %16, %544 : vector<1x256xf32>
    %546 = arith.addf %535, %545 : vector<1x256xf32>
    %c0_212 = arith.constant 0 : index
    %c102 = arith.constant 102 : index
    %547 = vector.load %arg5[%c0_212, %c102] : memref<2x358xf32, #tpu.memory_space<vmem>>, vector<1x256xf32>
    %c1_213 = arith.constant 1 : index
    %c102_214 = arith.constant 102 : index
    %548 = vector.load %arg5[%c1_213, %c102_214] : memref<2x358xf32, #tpu.memory_space<vmem>>, vector<1x256xf32>
    %c48_215 = arith.constant 48 : index
    %549 = memref.load %arg1[%c48_215] : memref<98xf32, #tpu.memory_space<smem>>
    %c97_216 = arith.constant 97 : index
    %550 = memref.load %arg1[%c97_216] : memref<98xf32, #tpu.memory_space<smem>>
    %551 = vector.broadcast %549 : f32 to vector<1x256xf32>
    %552 = arith.mulf %547, %551 : vector<1x256xf32>
    %553 = vector.broadcast %550 : f32 to vector<1x256xf32>
    %554 = arith.mulf %548, %553 : vector<1x256xf32>
    %555 = arith.addf %552, %554 : vector<1x256xf32>
    %556 = arith.mulf %17, %555 : vector<1x256xf32>
    %557 = arith.addf %546, %556 : vector<1x256xf32>
    %558 = arith.negf %557 : vector<1x256xf32>
    %559 = math.exp %558 : vector<1x256xf32>
    %cst_217 = arith.constant 1.000000e+00 : f32
    %560 = vector.broadcast %cst_217 : f32 to vector<1x256xf32>
    %561 = arith.addf %560, %559 : vector<1x256xf32>
    %562 = arith.divf %560, %561 : vector<1x256xf32>
    %c0_218 = arith.constant 0 : index
    %c0_219 = arith.constant 0 : index
    %c0_220 = arith.constant 0 : index
    %563 = vector.load %arg3[%c0_218, %c0_219, %c0_220] : memref<1x4x256xf32, #tpu.memory_space<vmem>>, vector<1x4x256xf32>
    %564 = vector.shape_cast %563 : vector<1x4x256xf32> to vector<4x256xf32>
    %565 = vector.broadcast %562 : vector<1x256xf32> to vector<4x256xf32>
    %566 = arith.mulf %564, %565 : vector<4x256xf32>
    %c0_221 = arith.constant 0 : index
    %c0_222 = arith.constant 0 : index
    %c0_223 = arith.constant 0 : index
    %567 = vector.load %arg4[%c0_221, %c0_222, %c0_223] : memref<1x4x256xf32, #tpu.memory_space<vmem>>, vector<1x4x256xf32>
    %568 = vector.shape_cast %567 : vector<1x4x256xf32> to vector<4x256xf32>
    %569 = vector.shape_cast %566 : vector<4x256xf32> to vector<1x4x256xf32>
    tpu.vector_store %arg4[%c0_221, %c0_222, %c0_223], %569 {strides = array<i32>} : memref<1x4x256xf32, #tpu.memory_space<vmem>>, vector<1x4x256xf32>,
    return
  }
  func.func @transform_0(%arg0: i32) -> i32 {
    %c0_i32 = arith.constant 0 : i32
    %c0_i32_0 = arith.constant 0 : i32
    return %c0_i32 : i32
  }
  func.func @transform_1(%arg0: i32) -> (i32, i32) {
    %c0_i32 = arith.constant 0 : i32
    %c0_i32_0 = arith.constant 0 : i32
    %c0_i32_1 = arith.constant 0 : i32
    return %c0_i32, %c0_i32_0 : i32, i32
  }
  func.func @transform_2(%arg0: i32) -> (i32, i32, i32) {
    %c0_i32 = arith.constant 0 : i32
    %c0_i32_0 = arith.constant 0 : i32
    %c0_i32_1 = arith.constant 0 : i32
    return %arg0, %c0_i32, %c0_i32_0 : i32, i32, i32
  }
  func.func @transform_3(%arg0: i32) -> (i32, i32, i32) {
    %c0_i32 = arith.constant 0 : i32
    %c0_i32_0 = arith.constant 0 : i32
    %c0_i32_1 = arith.constant 0 : i32
    return %arg0, %c0_i32, %c0_i32_0 : i32, i32, i32
  }
}

</mosaic_0001>

<bundles_post_ra>
// kernel: cbam_spatial.1
= control target key start
LH: loop header
LB: loop body
LE: loop exit
PB: predicated region body
PF: predicated region fallthrough
CT: control target
= control target key end

     0   :  { %s2183_s0 = inlined_call_operand.vmem [shape: f32[98], index: 0, kind: input, shape index: {}]   ;;  %s2184_s1 = inlined_call_operand.vmem [shape: f32[7,256], index: 1, kind: input, shape index: {}]   ;;  %s2185_s2 = inlined_call_operand.vmem [shape: f32[2,4,256], index: 2, kind: input, shape index: {}]   ;;  %s2186_s3 = inlined_call_operand.vmem [shape: f32[2,4,256], index: 3, kind: output, shape index: {}]  }
   0x1   :  { %2236 = sst [smem:[#allocation50_spill]] %s2183_s0 }
   0x2   :  { %2237 = sst [smem:[#allocation51_spill]] %s2184_s1 }
   0x3   :  { %2238 = sst [smem:[#allocation52_spill]] %s2185_s2 }
   0x4   :  { %2239 = sst [smem:[#allocation53_spill]] %s2186_s3 }
   0x5   :  { %8 = vsyncpa [#allocation4], 0  ;;  %s1451_s12 = smov 0  }
   0x6 LB: > { %2240 = sst [smem:[#allocation6_spill]] %s1377_s12  ;;  %s1157_s13 = sadd.s32 4294967295, %s1377_s12   ;;  %s1377_s12 = sphi %s1451_s12, %s14_s12  }
   0x7   : > { %p1159_p0 = scmp.ge.s32.totalorder %s1377_s12, 1  ;;  %p113_p1 = scmp.lt.s32.totalorder %s1377_s12, 3 }
   0x8   : > { %s2241_s0 = sld [smem:[#allocation50_spill]]  ;;  %p1284_p3 = scmp.eq.s32.totalorder %s1157_s13, 0 }
   0x9   : > { %p1462_p2 = pnand %p1159_p0, %p113_p1 }
   0xb   : > { %p1280_p4 = pneg %p1462_p2 }
   0xd   : > { %p1281_p5 = pnand %p1284_p3, %p1280_p4 }
   0xe   : > { %s126_s16 = sshll.u32 %s2241_s0, 4  ;;  %s127_s16 = int_to_ptr.vmem [resolvable:$true] %s126_s16 }
   0xf   : > { %s1352_s18 = scalar_lea.vmem %s127_s16, 16  ;;  %p1354_p7 = pneg %p1281_p5 }
  0x10   : > { %p1353_p6 = scmp.ne.s32.totalorder %s127_s16, %s1352_s18  ;;  %p1360_p10 = scmp.lt.s32.totalorder %s127_s16, %s127_s16 }
  0x11   : > { %p1361_p11 = scmp.lt.s32.totalorder %s1352_s18, %s1352_s18 }
  0x12   : > { %p1355_p8 = pnand %p1354_p7, %p1353_p6 }
  0x13   : > { %p1362_p12 = por %p1361_p11, %p1360_p10 }
  0x14   : > { %p1356_p9 = pneg %p1355_p8 }
  0x16   : > { %p1363_p13 = pnand %p1362_p12, %p1356_p9 }
  0x18   : > { %1366 = shalt.err (!%p1363_p13)
}
  0x19   : > { %s1379_s19 = smov [#allocation3]   ;;  %150 = sbr.rel (%p1462_p2) target bundleno = 449 (0x1c1), region = 32 }
  0x1a   : > { %1283 = dma.vmem_to_smem (!%p1281_p5), %s127_s16, 16, %s1379_s19, [#allocation4]  }
  0x20   : > { %1372 = dma.done.wait (%p1284_p3), [#allocation4], 16  }
  0x21   : > { %1374 = vsyncadd (%p1284_p3), [#allocation4], 4294967280 }
  0x22   : > { %156 = sfence }
  0x23   : > { %p175_p0 = scmp.lt.s32.totalorder %s1157_s13, 1  ;;  %vm218_vm0 = vcmask 1041408   ;;  %vm219_vm1 = vcmask 1043458   ;;  %vm221_vm2 = vcmask 832516   ;;  %vm189_vm5 = vcmask 1043456   ;;  %s2244_s2 = sld [smem:[#allocation52_spill]] }
  0x24   : > { %vm220_vm3 = vmor %vm219_vm1, %vm218_vm0  ;;  %v1380_v0 = vmov 0.0   ;;  %v1381_v13 = vmov 1966171168   ;;  %v230_v15 = vlaneseq  ;;  %s1382_s24 = smov 51   ;;  %s1487_s25 = sld [smem:[#allocation3 + $0x3]]  ;;  %vm244_vm8 = vcmask 416768  }
  0x25   : > { %s2356_s13 = smov (!%p175_p0, %s1157_s13), 1  ;;  %vm222_vm4 = vmor %vm221_vm2, %vm220_vm3  ;;  %v228_v14 = vunpack.c.l.s4 %v1381_v13  ;;  %s1489_s26 = sld [smem:[#allocation3 + $0x1]]  ;;  %vm313_vm10 = vcmask 1039360   ;;  %vm345_vm11 = vcmask 1022976   ;;  %vm329_vm12 = vcmask 1031168  }
  0x26   : > { %2243 = sst [smem:[#allocation7_spill]] %s2356_s13  ;;  %s2187_s20 = sshll.u32 %s2356_s13, 3  ;;  %223 = vst.msk [vmem:[#allocation2] sm:$0x3f] %vm222_vm4, %v1380_v0  ;;  %v1484_v25 = vshrl.u32 %v230_v15, 7  ;;  %vm1533_vm6 = vcmp.ge.s32.totalorder %v230_v15, 51 }
  0x27   : > { %v229_v24 = vunpack.c.0.s8 %v228_v14  ;;  %s1491_s27 = sld [smem:[#allocation3 + $0x5]]  ;;  %s1493_s28 = sld [smem:[#allocation3 + $0x2]]  ;;  %vm1537_vm7 = vcmp.lt.s32.totalorder %v230_v15, 307  ;;  %vm377_vm13 = vcmask 1006592   ;;  %vm361_vm14 = vcmask 1014784  }
  0x28   : > { %s1495_s29 = sld [smem:[#allocation3 + $0x7]]  ;;  %s1497_s30 = sld [smem:[#allocation3 + $0x4]]  ;;  %vm250_vm9 = vmand %vm1533_vm6, %vm1537_vm7  ;;  %vm409_vm15 = vcmask 916480   ;;  %vm393_vm0 = vcmask 998400   ;;  %vm441_vm1 = vcmask 900096   ;;  %vm425_vm2 = vcmask 908288  }
  0x29   : > { %s1481_s23 = scalar_lea.vmem %s2244_s2, %s2187_s20  ;;  %v232_v35 = vsub.s32 %v229_v24, %v1484_v25  ;;  %s1499_s4 = sld [smem:[#allocation3 + $0x9]]  ;;  %vm473_vm3 = vcmask 883712   ;;  %vm457_vm4 = vcmask 891904   ;;  %vm489_vm6 = vcmask 875520  }
  0x2a   : > { %2245 = sst [smem:[#allocation8_spill]] %s1481_s23  ;;  %v185_v1 = vld [vmem:[%s1481_s23] sm:$0xff]  ;;  %s1501_s5 = sld [smem:[#allocation3 + $0x34]]  ;;  %v336_v50 = vstv %s1487_s25  ;;  %vm537_vm7 = vcmask 777216  }
  0x2b   : > { %v187_v2 = vcombine.high %v185_v1, %v185_v1  ;;  %v190_v3 = vsel %vm189_vm5, %v185_v1, 0.0  ;;  %v204_v4 = vsel %vm189_vm5, %v185_v1, -inf  ;;  %s1503_s6 = sld [smem:[#allocation3 + $0x6]]  ;;  %s1505_s7 = sld [smem:[#allocation3 + $0x32]]  ;;  %v304_v52 = vstv %s1489_s26 }
  0x2c   : > { %v191_v5 = vrot.slane %v190_v3, 4  ;;  %v205_v6 = vrot.slane %v204_v4, 4  ;;  %s1507_s8 = sld [smem:[#allocation3 + $0x36]]  ;;  %s1509_s9 = sld [smem:[#allocation3 + $0x33]] }
  0x2d   : > { %v197_v7 = vsel %vm189_vm5, %v187_v2, 0.0  ;;  %v211_v8 = vsel %vm189_vm5, %v187_v2, -inf  ;;  %2246 = sst [smem:[#allocation9_spill]] %s1493_s28  ;;  %s1511_s10 = sld [smem:[#allocation3 + $0x38]]  ;;  %v368_v53 = vstv %s1491_s27  ;;  %v320_v54 = vstv %s1493_s28 }
  0x2e   : > { %v192_v9 = vadd.f32 %v191_v5, %v190_v3  ;;  %v198_v10 = vrot.slane %v197_v7, 4  ;;  %v206_v11 = vmax.f32 %v204_v4, %v205_v6  ;;  %v212_v12 = vrot.slane %v211_v8, 4  ;;  %2247 = sst [smem:[#allocation10_spill]] %s1495_s29  ;;  %s1513_s11 = sld [smem:[#allocation3 + $0x35]] }
  0x2f   : > { %2248 = sst [smem:[#allocation11_spill]] %s1497_s30  ;;  %s1515_s14 = sld [smem:[#allocation3 + $0x3a]]  ;;  %v400_v55 = vstv %s1495_s29  ;;  %v352_v56 = vstv %s1497_s30  ;;  %v432_v57 = vstv %s1499_s4  ;;  %vm505_vm5 = vcmask 867328  }
  0x30   : > { %v193_v16 = vrot.slane %v192_v9, 2  ;;  %v199_v17 = vadd.f32 %v198_v10, %v197_v7  ;;  %v207_v18 = vrot.slane %v206_v11, 2  ;;  %v213_v19 = vmax.f32 %v211_v8, %v212_v12  ;;  %2249 = sst [smem:[#allocation12_spill]] %s1499_s4  ;;  %s1517_s15 = sld [smem:[#allocation3 + $0x37]] }
  0x31   : > { %2250 = sst [smem:[#allocation13_spill]] %s1503_s6  ;;  %s1519_s16 = sld [smem:[#allocation3 + $0xb]]  ;;  %v384_v58 = vstv %s1503_s6  ;;  %v338_v59 = vstv %s1501_s5  ;;  %v306_v60 = vstv %s1505_s7 }
  0x32   : > { %v194_v20 = vadd.f32 %v193_v16, %v192_v9  ;;  %v200_v21 = vrot.slane %v199_v17, 2  ;;  %v208_v22 = vmax.f32 %v206_v11, %v207_v18  ;;  %v214_v23 = vrot.slane %v213_v19, 2  ;;  %s1521_s17 = sld [smem:[#allocation3 + $0x3c]]  ;;  %s1523_s18 = sld [smem:[#allocation3 + $0x8]] }
  0x33   : > { %2251 = sst [smem:[#allocation14_spill]] %s1511_s10  ;;  %s1525_s19 = sld [smem:[#allocation3 + $0x39]]  ;;  %v370_v61 = vstv %s1507_s8  ;;  %v322_v62 = vstv %s1509_s9  ;;  %v402_v63 = vstv %s1511_s10 }
  0x34   : > { %v195_v26 = vrot.slane %v194_v20, 1  ;;  %v201_v27 = vadd.f32 %v200_v21, %v199_v17  ;;  %v209_v28 = vrot.slane %v208_v22, 1  ;;  %v215_v29 = vmax.f32 %v213_v19, %v214_v23  ;;  %2252 = sst [smem:[#allocation15_spill]] %s1513_s11  ;;  %s1527_s21 = sld [smem:[#allocation3 + $0xd]] }
  0x35   : > { %2253 = sst [smem:[#allocation16_spill]] %s1515_s14  ;;  %s1529_s22 = sld [smem:[#allocation3 + $0x3e]]  ;;  %v354_v0 = vstv %s1513_s11  ;;  %v434_v1 = vstv %s1515_s14 }
  0x36   : > { %v196_v30 = vadd.f32 %v195_v26, %v194_v20  ;;  %v202_v31 = vrot.slane %v201_v27, 1  ;;  %v210_v32 = vmax.f32 %v208_v22, %v209_v28  ;;  %v216_v33 = vrot.slane %v215_v29, 1  ;;  %2254 = sst [smem:[#allocation17_spill]] %s1517_s15  ;;  %s1543_s0 = sld [smem:[#allocation3 + $0xf]] }
  0x37   : > { %2255 = sst [smem:[#allocation18_spill]] %s1519_s16  ;;  %s1541_s20 = sld [smem:[#allocation3 + $0x3b]]  ;;  %v386_v2 = vstv %s1517_s15  ;;  %v464_v3 = vstv %s1519_s16 }
  0x38   : > { %v203_v34 = vadd.f32 %v202_v31, %v201_v27  ;;  %v217_v36 = vmax.f32 %v215_v29, %v216_v33  ;;  %2256 = sst [smem:[#allocation19_spill]] %s1521_s17  ;;  %s1545_s2 = sld [smem:[#allocation3 + $0x40]]  ;;  %v466_v4 = vstv %s1521_s17  ;;  %v416_v5 = vstv %s1523_s18 }
  0x39   : > { %2257 = sst [smem:[#allocation20_spill]] %s1523_s18  ;;  %s1547_s12 = sld [smem:[#allocation3 + $0xc]]  ;;  %v418_v6 = vstv %s1525_s19 }
  0x3a   : > { %v226_v37 = vcombine.low %v196_v30, %v203_v34  ;;  %v254_v38 = vcombine.low %v210_v32, %v217_v36  ;;  %2258 = sst [smem:[#allocation21_spill]] %s1525_s19  ;;  %s1553_s3 = sld [smem:[#allocation3 + $0x3d]]  ;;  %v496_v7 = vstv %s1527_s21 }
  0x3b   : > { %2259 = sst [smem:[#allocation22_spill]] %s1527_s21  ;;  %s1555_s23 = sld [smem:[#allocation3 + $0x11]]  ;;  %v498_v8 = vstv %s1529_s22 }
  0x3c   : > { %v233_v39 = vrot.slane %v226_v37, %v232_v35  ;;  %v261_v40 = vrot.slane %v254_v38, %v232_v35  ;;  %2265 = sst [smem:[#allocation24_spill]] %s1543_s0  ;;  %s1559_s1 = sld [smem:[#allocation3 + $0xe]]  ;;  %v528_v12 = vstv %s1543_s0 }
  0x3d   : > { %s1557_s13 = sld [smem:[#allocation3 + $0x42]]  ;;  %s1601_s25 = sld [smem:[#allocation3 + $0x20]]  ;;  %v450_v10 = vstv %s1541_s20 }
  0x3e   : > { %v240_v41 = vrot.slane %v233_v39, %v232_v35  ;;  %v268_v42 = vrot.slane %v261_v40, %v232_v35  ;;  %2266 = sst [smem:[#allocation25_spill]] %s1545_s2  ;;  %s1603_s26 = sld [smem:[#allocation3 + $0x51]] }
  0x3f   : > { %2267 = sst [smem:[#allocation26_spill]] %s1547_s12  ;;  %s1562_s12 = sld [smem:[#allocation3 + $0x3f]] }
  0x40   : > { %241 = vrot.lane.b32.xlu0 %v240_v41, %s1382_s24  ;;  %2268 = sst [smem:[#allocation27_spill]] %s1553_s3  ;;  %s1564_s2 = sld [smem:[#allocation3 + $0x13]] }
  0x41   : > { %2269 = sst [smem:[#allocation28_spill]] %s1555_s23  ;;  %s1575_s23 = sld [smem:[#allocation3 + $0x41]] }
  0x42   : > { %2271 = sst [smem:[#allocation30_spill]] %s1559_s1  ;;  %s1582_s3 = sld [smem:[#allocation3 + $0x43]] }
  0x43   : > { %2270 = sst [smem:[#allocation29_spill]] %s1557_s13  ;;  %s1571_s13 = sld [smem:[#allocation3 + $0x44]]  ;;  %v800_v39 = vstv %s1601_s25 }
  0x44   : > { %269 = vrot.lane.b32.xlu0 %v268_v42, %s1382_s24  ;;  %s1531_s24 = sld [smem:[#allocation3 + $0xa]]  ;;  %s1573_s1 = sld [smem:[#allocation3 + $0x10]]  ;;  %v802_v40 = vstv %s1603_s26 }
  0x45   : > { %2272 = sst [smem:[#allocation31_spill]] %s1562_s12  ;;  %s1577_s12 = sld [smem:[#allocation3 + $0x15]] }
  0x46   : > { %2273 = sst [smem:[#allocation32_spill]] %s1564_s2  ;;  %s1580_s2 = sld [smem:[#allocation3 + $0x46]] }
  0x47   : > { %2276 = sst [smem:[#allocation35_spill]] %s1575_s23  ;;  %s1590_s23 = sld [smem:[#allocation3 + $0x54]] }
  0x48   : > { %2279 = sst [smem:[#allocation38_spill]] %s1582_s3  ;;  %s1609_s28 = sld [smem:[#allocation3 + $0x25]]  ;;  %v578_v32 = vstv %s1582_s3 }
  0x49   : > { %2274 = sst [smem:[#allocation33_spill]] %s1571_s13  ;;  %s1611_s30 = sld [smem:[#allocation3 + $0x56]]  ;;  %v594_v22 = vstv %s1571_s13 }
  0x4a   : > { %2260 = sst [smem:[#allocation23_spill]] %s1531_s24  ;;  %s1617_s6 = sld [smem:[#allocation3 + $0x22]]  ;;  %v448_v9 = vstv %s1531_s24 }
  0x4b   : > { %2275 = sst [smem:[#allocation34_spill]] %s1573_s1  ;;  %s1588_s1 = sld [smem:[#allocation3 + $0x23]]  ;;  %v624_v30 = vstv %s1577_s12 }
  0x4c   : > { %2277 = sst [smem:[#allocation36_spill]] %s1577_s12  ;;  %s2285_s4 = sld [smem:[#allocation25_spill]]  ;;  %v626_v31 = vstv %s1580_s2 }
  0x4d   : > { %2278 = sst [smem:[#allocation37_spill]] %s1580_s2  ;;  %s1619_s5 = sld [smem:[#allocation3 + $0x53]]  ;;  %v850_v38 = vstv %s1590_s23 }
  0x4e   : > { %2281 = sst [smem:[#allocation40_spill]] %s1603_s26  ;;  %s2287_s7 = sld [smem:[#allocation26_spill]]  ;;  %v880_v41 = vstv %s1609_s28 }
  0x4f   : > { %2282 = sst [smem:[#allocation41_spill]] %s1609_s28  ;;  %s2288_s8 = sld [smem:[#allocation27_spill]] }
  0x50   : > { %2283 = sst [smem:[#allocation42_spill]] %s1611_s30  ;;  %s2289_s9 = sld [smem:[#allocation28_spill]] }
  0x51   : > { %2280 = sst [smem:[#allocation39_spill]] %s1588_s1  ;;  %s2290_s29 = sld [smem:[#allocation29_spill]]  ;;  %v848_v33 = vstv %s1588_s1 }
  0x52   : > { %2284 = sst [smem:[#allocation43_spill]] %s1617_s6  ;;  %s1625_s30 = sld [smem:[#allocation3 + $0x27]]  ;;  %v530_v13 = vstv %s2285_s4 }
  0x53   : > { %2286 = sst [smem:[#allocation44_spill]] %s1619_s5  ;;  %s2292_s10 = sld [smem:[#allocation30_spill]] }
  0x54   : > { %s1627_s11 = sld [smem:[#allocation3 + $0x58]]  ;;  %s2294_s15 = sld [smem:[#allocation31_spill]]  ;;  %v480_v14 = vstv %s2287_s7 }
  0x55   : > { %s2295_s14 = sld [smem:[#allocation32_spill]]  ;;  %s1633_s5 = sld [smem:[#allocation3 + $0x24]]  ;;  %v482_v15 = vstv %s2288_s8 }
  0x56   : > { %s1635_s16 = sld [smem:[#allocation3 + $0x55]]  ;;  %s2297_s18 = sld [smem:[#allocation34_spill]]  ;;  %v560_v16 = vstv %s2289_s9 }
  0x57   : > { %s2298_s19 = sld [smem:[#allocation35_spill]]  ;;  %s1643_s17 = sld [smem:[#allocation3 + $0x29]]  ;;  %v562_v17 = vstv %s2290_s29 }
  0x58   : > { %2291 = sst [smem:[#allocation45_spill]] %s1625_s30  ;;  %s1649_s24 = sld [smem:[#allocation3 + $0x5a]] }
  0x59   : > { %v512_v18 = vstv %s2292_s10  ;;  %s1651_s21 = sld [smem:[#allocation3 + $0x26]]  ;;  %s1659_s7 = sld [smem:[#allocation3 + $0x57]] }
  0x5a   : > { %2293 = sst [smem:[#allocation46_spill]] %s1627_s11  ;;  %v514_v19 = vstv %s2294_s15  ;;  %s1665_s10 = sld [smem:[#allocation3 + $0x2b]] }
  0x5b   : > { %2296 = sst [smem:[#allocation47_spill]] %s1633_s5  ;;  %v592_v21 = vstv %s2295_s14  ;;  %s1667_s9 = sld [smem:[#allocation3 + $0x5c]] }
  0x5c   : > { %v544_v23 = vstv %s2297_s18  ;;  %s1675_s18 = sld [smem:[#allocation3 + $0x59]]  ;;  %s2301_s14 = sld [smem:[#allocation42_spill]] }
  0x5d   : > { %v546_v24 = vstv %s2298_s19  ;;  %s1673_s19 = sld [smem:[#allocation3 + $0x28]]  ;;  %s1679_s0 = sld [smem:[#allocation3 + $0x2d]] }
  0x5e   : > { %s1681_s12 = sld [smem:[#allocation3 + $0x5e]]  ;;  %s1687_s2 = sld [smem:[#allocation3 + $0x2a]] }
  0x5f   : > { %s2303_s3 = sld [smem:[#allocation44_spill]]  ;;  %s1689_s1 = sld [smem:[#allocation3 + $0x5b]] }
  0x60   : > { %s1383_s15 = smov 125   ;;  %s1384_s29 = smov 127  }
  0x61   : > { %s1699_s28 = sld [smem:[#allocation3 + $0x2f]]  ;;  %s1701_s26 = sld [smem:[#allocation3 + $0x60]] }
  0x62   : > { %2299 = sst [smem:[#allocation48_spill]] %s1675_s18  ;;  %v882_v44 = vstv %s2301_s14  ;;  %s1709_s13 = sld [smem:[#allocation3 + $0x5d]] }
  0x63   : > { %2302 = sst [smem:[#allocation9_spill]] %s1679_s0  ;;  %s1729_s4 = sld [smem:[#allocation3 + $0x2e]] }
  0x64   : > { %2304 = sst [smem:[#allocation42_spill]] %s1687_s2  ;;  %s1390_s22 = smov 122  }
  0x65   : > { %2305 = sst [smem:[#allocation49_spill]] %s1689_s1  ;;  %s1790_s20 = sld [smem:[#allocation3 + $0x30]] }
  0x66   : > { %s1822_s8 = sld [smem:[#allocation3 + $0x61]]  ;;  %s1393_s23 = smov 106  }
  0x67   : > { %s1394_s14 = smov 109   ;;  %s1860_s25 = sld [smem:[#allocation3 + $0x12]] }
  0x68   : > { %2310 = sst [smem:[#allocation14_spill]] %s1709_s13  ;;  %s1907_s27 = sld [smem:[#allocation3 + $0x17]] }
  0xb2   : > { %v242_v45 = vpop.permute.xlu0 %241 }
  0xb3   : > { %v243_v46 = vrot.slane %v242_v45, 7 }
  0xb5   : > { %v245_v47 = vsel %vm244_vm8, %v243_v46, %v242_v45  ;;  %v832_v45 = vstv %s1617_s6  ;;  %v834_v46 = vstv %s2303_s3  ;;  %s1386_s3 = smov 126   ;;  %s1389_s6 = smov 110  }
  0xb6   : > { %251 = vst.msk [vmem:[#allocation2] ss:$2 sm:$0x7] %vm250_vm9, %v245_v47  ;;  %v270_v48 = vpop.permute.xlu0 %269  ;;  %v912_v47 = vstv %s1625_s30  ;;  %s1752_s30 = sld [smem:[#allocation3 + $0x5f]] }
  0xb7   : > { %v271_v49 = vrot.slane %v270_v48, 7 }
  0xb9   : > { %v272_v51 = vsel %vm244_vm8, %v271_v49, %v270_v48  ;;  %v914_v48 = vstv %s1627_s11  ;;  %v864_v49 = vstv %s1633_s5  ;;  %s1385_s11 = smov 123   ;;  %s1909_s5 = sld [smem:[#allocation3 + $0x14]]  ;;  %vm521_vm8 = vcmask 785408  }
  0xba   : > { %275 = vst.msk [vmem:[#allocation2 + $0x1] ss:$2 sm:$0x7] %vm250_vm9, %v272_v51  ;;  %vm569_vm9 = vcmask 760832  }
  0xbd   : > { %v1637_v11 = vld [vmem:[#allocation2] ss:$2 sm:$0x7] }
  0xbe   : > { %v337_v26 = vmul.f32 %v336_v50, %v1637_v11  ;;  %v305_v28 = vmul.f32 %v304_v52, %v1637_v11  ;;  %v369_v42 = vmul.f32 %v368_v53, %v1637_v11  ;;  %v321_v43 = vmul.f32 %v320_v54, %v1637_v11 }
  0xbf   : > { %v866_v54 = vstv %s1635_s16  ;;  %s1893_s16 = sld [smem:[#allocation3 + $0x48]] }
  0xc1   : > { %v1653_v20 = vld [vmem:[#allocation2 + $0x1] ss:$2 sm:$0x7] }
  0xc2   : > { %v339_v27 = vmul.f32 %v338_v59, %v1653_v20  ;;  %v307_v29 = vmul.f32 %v306_v60, %v1653_v20  ;;  %v371_v36 = vmul.f32 %v370_v61, %v1653_v20  ;;  %v323_v37 = vmul.f32 %v322_v62, %v1653_v20 }
  0xc3   : > { %v403_v52 = vmul.f32 %v402_v63, %v1653_v20  ;;  %v355_v53 = vmul.f32 %v354_v0, %v1653_v20  ;;  %v944_v59 = vstv %s1643_s17  ;;  %v946_v60 = vstv %s1649_s24  ;;  %s1895_s17 = sld [smem:[#allocation3 + $0x45]]  ;;  %s1403_s24 = smov 78  }
  0xc4   : > { %v340_v34 = vadd.f32 %v339_v27, %v337_v26  ;;  %v308_v35 = vadd.f32 %v307_v29, %v305_v28  ;;  %v372_v50 = vadd.f32 %v371_v36, %v369_v42  ;;  %v324_v51 = vadd.f32 %v323_v37, %v321_v43 }
  0xc5   : > { %v896_v61 = vstv %s1651_s21  ;;  %v401_v62 = vmul.f32 %v400_v55, %v1637_v11  ;;  %v353_v63 = vmul.f32 %v352_v56, %v1637_v11  ;;  %v898_v0 = vstv %s1659_s7  ;;  %s1395_s7 = smov 95   ;;  %s1404_s21 = smov 90  }
  0xc6   : > { %342 = vrot.lane.b32.xlu0 %v340_v34, %s1383_s15  ;;  %310 = vrot.lane.b32.xlu1 %v308_v35, %s1384_s29  ;;  %s1707_s15 = sld [smem:[#allocation3 + $0x2c]]  ;;  %v976_v26 = vstv %s1665_s10  ;;  %v435_v27 = vmul.f32 %v434_v1, %v1653_v20  ;;  %v978_v28 = vstv %s1667_s9  ;;  %v387_v55 = vmul.f32 %v386_v2, %v1653_v20  ;;  %s1387_s29 = smov 112  }
  0xc7   : > { %v928_v29 = vstv %s1673_s19  ;;  %v930_v34 = vstv %s1675_s18  ;;  %v404_v35 = vadd.f32 %v403_v52, %v401_v62  ;;  %v356_v36 = vadd.f32 %v355_v53, %v353_v63  ;;  %s1388_s18 = smov 124   ;;  %s2030_s10 = sld [smem:[#allocation3 + $0x1f]] }
  0xc8   : > { %v1008_v56 = vstv %s1679_s0  ;;  %v433_v37 = vmul.f32 %v432_v57, %v1637_v11  ;;  %v1010_v42 = vstv %s1681_s12  ;;  %v960_v1 = vstv %s1687_s2  ;;  %s1396_s2 = smov 107   ;;  %s1942_s12 = sld [smem:[#allocation3 + $0x4a]] }
  0xc9   : > { %v962_v43 = vstv %s1689_s1  ;;  %v385_v2 = vmul.f32 %v384_v58, %v1637_v11  ;;  %v465_v52 = vmul.f32 %v464_v3, %v1637_v11  ;;  %v994_v62 = vstv %s1709_s13  ;;  %s1391_s13 = smov 108   ;;  %s2008_s0 = sld [smem:[#allocation3 + $0x4e]] }
  0xca   : > { %374 = vrot.lane.b32.xlu0 %v372_v50, %s1385_s11  ;;  %326 = vrot.lane.b32.xlu1 %v324_v51, %s1386_s3  ;;  %v1040_v50 = vstv %s1699_s28  ;;  %v1042_v51 = vstv %s1701_s26  ;;  %v436_v57 = vadd.f32 %v435_v27, %v433_v37  ;;  %v419_v58 = vmul.f32 %v418_v6, %v1653_v20  ;;  %s1392_s11 = smov 111   ;;  %s1397_s28 = smov 93  }
  0xcb   : > { %v388_v63 = vadd.f32 %v387_v55, %v385_v2  ;;  %v499_v27 = vmul.f32 %v498_v8, %v1653_v20  ;;  %v451_v3 = vmul.f32 %v450_v10, %v1653_v20  ;;  %v483_v55 = vmul.f32 %v482_v15, %v1653_v20  ;;  %s1399_s3 = smov 91   ;;  %s2014_s1 = sld [smem:[#allocation3 + $0x1d]] }
  0xcc   : > { %v992_v53 = vstv %s1707_s15  ;;  %v417_v6 = vmul.f32 %v416_v5, %v1637_v11  ;;  %v497_v8 = vmul.f32 %v496_v7, %v1637_v11  ;;  %v515_v10 = vmul.f32 %v514_v19, %v1653_v20  ;;  %s1406_s19 = smov 79   ;;  %s2048_s9 = sld [smem:[#allocation3 + $0x1e]] }
  0xcd   : > { %v449_v15 = vmul.f32 %v448_v9, %v1637_v11  ;;  %v481_v37 = vmul.f32 %v480_v14, %v1637_v11  ;;  %v561_v5 = vmul.f32 %v560_v16, %v1637_v11  ;;  %v513_v9 = vmul.f32 %v512_v18, %v1637_v11  ;;  %s1409_s26 = smov 63   ;;  %s1413_s15 = smov 59  }
  0xce   : > { %406 = vrot.lane.b32.xlu0 %v404_v35, %s1387_s29  ;;  %358 = vrot.lane.b32.xlu1 %v356_v36, %s1388_s18  ;;  %v467_v35 = vmul.f32 %v466_v4, %v1653_v20  ;;  %v531_v36 = vmul.f32 %v530_v13, %v1653_v20  ;;  %v563_v4 = vmul.f32 %v562_v17, %v1653_v20  ;;  %v1024_v13 = vstv %s1729_s4  ;;  %s1944_s29 = sld [smem:[#allocation3 + $0x47]]  ;;  %s1959_s18 = sld [smem:[#allocation3 + $0x19]] }
  0xcf   : > { %v529_v17 = vmul.f32 %v528_v12, %v1637_v11  ;;  %v420_v19 = vadd.f32 %v419_v58, %v417_v6  ;;  %v500_v2 = vadd.f32 %v499_v27, %v497_v8  ;;  %v1809_v16 = vadd.f32 %v515_v10, %v513_v9  ;;  %s1988_s4 = sld [smem:[#allocation3 + $0x4c]] }
  0xd0   : > { %v468_v7 = vadd.f32 %v467_v35, %v465_v52  ;;  %v1807_v14 = vadd.f32 %v563_v4, %v561_v5  ;;  %v1814_v18 = vmul.f32 %v592_v21, %v1637_v11  ;;  %v1819_v52 = vmul.f32 %v594_v22, %v1653_v20 }
  0xd1   : > { %v532_v12 = vadd.f32 %v531_v36, %v529_v17  ;;  %v1026_v35 = vstv %s1752_s30  ;;  %v849_v58 = vmul.f32 %v848_v33, %v1637_v11  ;;  %v851_v27 = vmul.f32 %v850_v38, %v1653_v20  ;;  %s1990_s30 = sld [smem:[#allocation3 + $0x49]] }
  0xd2   : > { %438 = vrot.lane.b32.xlu0 %v436_v57, %s1389_s6  ;;  %390 = vrot.lane.b32.xlu1 %v388_v63, %s1390_s22  ;;  %v452_v57 = vadd.f32 %v451_v3, %v449_v15  ;;  %v484_v63 = vadd.f32 %v483_v55, %v481_v37  ;;  %v801_v3 = vmul.f32 %v800_v39, %v1637_v11  ;;  %v1056_v55 = vstv %s1790_s20  ;;  %s1400_s6 = smov 94   ;;  %s2000_s22 = sld [smem:[#allocation3 + $0x18]] }
  0xd3   : > { %v803_v21 = vmul.f32 %v802_v40, %v1653_v20  ;;  %v1839_v22 = vmul.f32 %v544_v23, %v1637_v11  ;;  %v881_v36 = vmul.f32 %v880_v41, %v1637_v11  ;;  %v883_v33 = vmul.f32 %v882_v44, %v1653_v20  ;;  %s2016_s20 = sld [smem:[#allocation3 + $0x1a]] }
  0xd4   : > { %v833_v38 = vmul.f32 %v832_v45, %v1637_v11  ;;  %v1850_v39 = vadd.f32 %v851_v27, %v849_v58  ;;  %v835_v23 = vmul.f32 %v834_v46, %v1653_v20  ;;  %v913_v41 = vmul.f32 %v912_v47, %v1637_v11 }
  0xd5   : > { %v1852_v40 = vadd.f32 %v803_v21, %v801_v3  ;;  %v1862_v44 = vadd.f32 %v883_v33, %v881_v36  ;;  %v915_v45 = vmul.f32 %v914_v48, %v1653_v20  ;;  %v865_v46 = vmul.f32 %v864_v49, %v1637_v11 }
  0xd6   : > { %470 = vrot.lane.b32.xlu0 %v468_v7, %s1391_s13  ;;  %422 = vrot.lane.b32.xlu1 %v420_v19, %s1392_s11  ;;  %v1871_v47 = vadd.f32 %v835_v23, %v833_v38  ;;  %v867_v4 = vmul.f32 %v866_v54, %v1653_v20  ;;  %v945_v6 = vmul.f32 %v944_v59, %v1637_v11  ;;  %s1398_s13 = smov 96   ;;  %s1961_s11 = sld [smem:[#allocation3 + $0x16]]  ;;  %v610_v58 = vstv %s1895_s17 }
  0xd7   : > { %v947_v8 = vmul.f32 %v946_v60, %v1653_v20  ;;  %v1882_v10 = vadd.f32 %v915_v45, %v913_v41  ;;  %v897_v48 = vmul.f32 %v896_v61, %v1637_v11  ;;  %v899_v49 = vmul.f32 %v898_v0, %v1653_v20  ;;  %s2026_s17 = sld [smem:[#allocation3 + $0x4d]] }
  0xd8   : > { %v977_v15 = vmul.f32 %v976_v26, %v1637_v11  ;;  %v1897_v54 = vadd.f32 %v867_v4, %v865_v46  ;;  %v979_v60 = vmul.f32 %v978_v28, %v1653_v20  ;;  %v929_v61 = vmul.f32 %v928_v29, %v1637_v11 }
  0xd9   : > { %v1899_v59 = vadd.f32 %v947_v8, %v945_v6  ;;  %v1911_v0 = vadd.f32 %v899_v49, %v897_v48  ;;  %v931_v26 = vmul.f32 %v930_v34, %v1653_v20  ;;  %v1009_v28 = vmul.f32 %v1008_v56, %v1637_v11 }
  0xda   : > { %502 = vrot.lane.b32.xlu0 %v500_v2, %s1393_s23  ;;  %454 = vrot.lane.b32.xlu1 %v452_v57, %s1394_s14  ;;  %v1058_v29 = vstv %s1822_s8  ;;  %v1920_v17 = vadd.f32 %v979_v60, %v977_v15  ;;  %v1011_v37 = vmul.f32 %v1010_v42, %v1653_v20  ;;  %v961_v5 = vmul.f32 %v960_v1, %v1637_v11  ;;  %s1998_s8 = sld [smem:[#allocation3 + $0x1b]]  ;;  %s1401_s14 = smov 80  }
  0xdb   : > { %v963_v7 = vmul.f32 %v962_v43, %v1653_v20  ;;  %v547_v34 = vmul.f32 %v546_v24, %v1653_v20  ;;  %v1934_v19 = vadd.f32 %v931_v26, %v929_v61  ;;  %v1041_v56 = vmul.f32 %v1040_v50, %v1637_v11  ;;  %s2010_s23 = sld [smem:[#allocation3 + $0x4b]] }
  0xdc   : > { %v1043_v2 = vmul.f32 %v1042_v51, %v1653_v20  ;;  %v1946_v42 = vadd.f32 %v1011_v37, %v1009_v28  ;;  %v993_v24 = vmul.f32 %v992_v53, %v1637_v11  ;;  %v995_v43 = vmul.f32 %v994_v62, %v1653_v20 }
  0xdd   : > { %v1948_v1 = vadd.f32 %v963_v7, %v961_v5  ;;  %v576_v50 = vstv %s1860_s25  ;;  %v1025_v53 = vmul.f32 %v1024_v13, %v1637_v11  ;;  %v1027_v62 = vmul.f32 %v1026_v35, %v1653_v20  ;;  %s1402_s25 = smov 92  }
  0xde   : > { %534 = vrot.lane.b32.xlu0 %v532_v12, %s1395_s7  ;;  %486 = vrot.lane.b32.xlu1 %v484_v63, %s1396_s2  ;;  %v1963_v51 = vadd.f32 %v1043_v2, %v1041_v56  ;;  %v627_v9 = vmul.f32 %v626_v31, %v1653_v20  ;;  %v1974_v57 = vadd.f32 %v995_v43, %v993_v24  ;;  %v658_v31 = vstv %s1893_s16  ;;  %s2024_s16 = sld [smem:[#allocation3 + $0x50]]  ;;  %s2032_s7 = sld [smem:[#allocation3 + $0x1c]] }
  0xdf   : > { %v1057_v12 = vmul.f32 %v1056_v55, %v1637_v11  ;;  %v1059_v63 = vmul.f32 %v1058_v29, %v1653_v20  ;;  %v579_v13 = vmul.f32 %v578_v32, %v1653_v20  ;;  %v1984_v35 = vadd.f32 %v1027_v62, %v1025_v53  ;;  %s2040_s2 = sld [smem:[#allocation3 + $0x52]] }
  0xe0   : > { %v625_v32 = vmul.f32 %v624_v30, %v1637_v11  ;;  %v608_v3 = vstv %s1909_s5  ;;  %v659_v36 = vmul.f32 %v658_v31, %v1653_v20  ;;  %v611_v33 = vmul.f32 %v610_v58, %v1653_v20  ;;  %s1405_s5 = smov 76  }
  0xe1   : > { %v1992_v27 = vadd.f32 %v1059_v63, %v1057_v12  ;;  %v690_v38 = vstv %s1942_s12  ;;  %v642_v23 = vstv %s1944_s29  ;;  %v609_v41 = vmul.f32 %v608_v3, %v1637_v11  ;;  %s2046_s12 = sld [smem:[#allocation3 + $0x21]]  ;;  %s1407_s29 = smov 74  }
  0xe2   : > { %566 = vrot.lane.b32.xlu0 %v1807_v14, %s1397_s28  ;;  %518 = vrot.lane.b32.xlu1 %v1809_v16, %s1398_s13  ;;  %v596_v14 = vadd.f32 %v1819_v52, %v1814_v18  ;;  %v548_v16 = vadd.f32 %v547_v34, %v1839_v22  ;;  %v577_v18 = vmul.f32 %v576_v50, %v1637_v11  ;;  %v656_v52 = vstv %s1907_s27  ;;  %s2042_s27 = sld [smem:[#allocation3 + $0x4f]]  ;;  %s1408_s28 = smov 77  }
  0xe3   : > { %v628_v21 = vadd.f32 %v627_v9, %v625_v32  ;;  %v657_v30 = vmul.f32 %v656_v52, %v1637_v11  ;;  %v688_v45 = vstv %s1959_s18  ;;  %v640_v46 = vstv %s1961_s11  ;;  %s1410_s13 = smov 75   ;;  %s1411_s18 = smov 61  }
  0xe4   : > { %v580_v22 = vadd.f32 %v579_v13, %v577_v18  ;;  %v612_v4 = vadd.f32 %v611_v33, %v609_v41  ;;  %v691_v6 = vmul.f32 %v690_v38, %v1653_v20  ;;  %v643_v8 = vmul.f32 %v642_v23, %v1653_v20  ;;  %s1412_s11 = smov 64  }
  0xe5   : > { %v660_v55 = vadd.f32 %v659_v36, %v657_v30  ;;  %v722_v48 = vstv %s1988_s4  ;;  %v674_v49 = vstv %s1990_s30  ;;  %v689_v15 = vmul.f32 %v688_v45, %v1637_v11  ;;  %s1414_s4 = smov 62   ;;  %s1415_s30 = smov 48  }
  0xe6   : > { %598 = vrot.lane.b32.xlu0 %v596_v14, %s1399_s3  ;;  %550 = vrot.lane.b32.xlu1 %v548_v16, %s1400_s6  ;;  %v641_v60 = vmul.f32 %v640_v46, %v1637_v11  ;;  %v720_v61 = vstv %s1998_s8  ;;  %v672_v26 = vstv %s2000_s22  ;;  %v723_v37 = vmul.f32 %v722_v48, %v1653_v20  ;;  %s1416_s3 = smov 60   ;;  %s1417_s6 = smov 46  }
  0xe7   : > { %v692_v28 = vadd.f32 %v691_v6, %v689_v15  ;;  %v675_v5 = vmul.f32 %v674_v49, %v1653_v20  ;;  %v754_v7 = vstv %s2008_s0  ;;  %v706_v34 = vstv %s2010_s23  ;;  %s1418_s8 = smov 58   ;;  %s1419_s22 = smov 44  }
  0xe8   : > { %v644_v29 = vadd.f32 %v643_v8, %v641_v60  ;;  %v721_v56 = vmul.f32 %v720_v61, %v1637_v11  ;;  %v673_v2 = vmul.f32 %v672_v26, %v1637_v11  ;;  %v752_v24 = vstv %s2014_s1  ;;  %s1420_s0 = smov 47   ;;  %s1421_s23 = smov 42  }
  0xe9   : > { %v704_v43 = vstv %s2016_s20  ;;  %v755_v62 = vmul.f32 %v754_v7, %v1653_v20  ;;  %v707_v9 = vmul.f32 %v706_v34, %v1653_v20  ;;  %v786_v12 = vstv %s2024_s16  ;;  %s1424_s1 = smov 43   ;;  %s1425_s20 = smov 29  }
  0xea   : > { %630 = vrot.lane.b32.xlu0 %v628_v21, %s1401_s14  ;;  %582 = vrot.lane.b32.xlu1 %v580_v22, %s1402_s25  ;;  %v724_v50 = vadd.f32 %v723_v37, %v721_v56  ;;  %v676_v53 = vadd.f32 %v675_v5, %v673_v2  ;;  %v738_v63 = vstv %s2026_s17  ;;  %v753_v14 = vmul.f32 %v752_v24, %v1637_v11  ;;  %s1422_s14 = smov 45   ;;  %s1423_s25 = smov 31  }
  0xeb   : > { %v705_v16 = vmul.f32 %v704_v43, %v1637_v11  ;;  %v784_v13 = vstv %s2030_s10  ;;  %v736_v31 = vstv %s2032_s7  ;;  %v787_v18 = vmul.f32 %v786_v12, %v1653_v20  ;;  %s1426_s16 = smov 32   ;;  %s1427_s17 = smov 27  }
  0xec   : > { %v756_v58 = vadd.f32 %v755_v62, %v753_v14  ;;  %v739_v52 = vmul.f32 %v738_v63, %v1653_v20  ;;  %v818_v3 = vstv %s2040_s2  ;;  %v770_v21 = vstv %s2042_s27  ;;  %s1430_s10 = smov 26   ;;  %s1174_s7 = sld [smem:[#allocation3 + $0x31]] }
  0xed   : > { %v708_v32 = vadd.f32 %v707_v9, %v705_v16  ;;  %v785_v22 = vmul.f32 %v784_v13, %v1637_v11  ;;  %v737_v36 = vmul.f32 %v736_v31, %v1637_v11  ;;  %v816_v33 = vstv %s2046_s12  ;;  %s291_s2 = sld [smem:[#allocation3]] }
  0xee   : > { %662 = vrot.lane.b32.xlu0 %v660_v55, %s1403_s24  ;;  %614 = vrot.lane.b32.xlu1 %v612_v4, %s1404_s21  ;;  %v768_v38 = vstv %s2048_s9  ;;  %v819_v41 = vmul.f32 %v818_v3, %v1653_v20  ;;  %v771_v45 = vmul.f32 %v770_v21, %v1653_v20  ;;  %v817_v46 = vmul.f32 %v816_v33, %v1637_v11  ;;  %s1428_s24 = smov 30   ;;  %s1429_s21 = smov 28   ;;  %v290_v20 = vld [vmem:[#allocation2 + $0x1] ss:$2 sm:$0x3] }
  0xef   : > { %v788_v23 = vadd.f32 %v787_v18, %v785_v22  ;;  %v740_v30 = vadd.f32 %v739_v52, %v737_v36  ;;  %v769_v55 = vmul.f32 %v768_v38, %v1637_v11 }
  0xf0   : > { %v820_v4 = vadd.f32 %v819_v41, %v817_v46 }
  0xf1   : > { %v772_v6 = vadd.f32 %v771_v45, %v769_v55 }
  0xf2   : > { %694 = vrot.lane.b32.xlu0 %v692_v28, %s1405_s5  ;;  %646 = vrot.lane.b32.xlu1 %v644_v29, %s1406_s19  ;;  %v295_v11 = vstv %s1174_s7  ;;  %s2349_s19 = sld [smem:[#allocation51_spill]] }
  0xf6   : > { %726 = vrot.lane.b32.xlu0 %v724_v50, %s1407_s29  ;;  %678 = vrot.lane.b32.xlu1 %v676_v53, %s1408_s28 }
  0xf8   : > { %v2108_v49 = vld [vmem:[%s2349_s19 + $0x3] ss:$8 sm:$0x3]  ;;  %v2114_v5 = vld [vmem:[%s2349_s19 + $0x4] ss:$8 sm:$0x3] }
  0xf9   : > { %v2120_v2 = vld [vmem:[%s2349_s19 + $0x5] ss:$8 sm:$0x3]  ;;  %v2126_v63 = vld [vmem:[%s2349_s19 + $0x6] ss:$8 sm:$0x3] }
  0xfa   : > { %758 = vrot.lane.b32.xlu0 %v756_v58, %s1409_s26  ;;  %710 = vrot.lane.b32.xlu1 %v708_v32, %s1410_s13 }
  0xfe   : > { %790 = vrot.lane.b32.xlu0 %v788_v23, %s1411_s18  ;;  %742 = vrot.lane.b32.xlu1 %v740_v30, %s1412_s11 }
 0x102   : > { %822 = vrot.lane.b32.xlu0 %v820_v4, %s1413_s15  ;;  %774 = vrot.lane.b32.xlu1 %v772_v6, %s1414_s4 }
 0x106   : > { %854 = vrot.lane.b32.xlu0 %v1850_v39, %s1415_s30  ;;  %806 = vrot.lane.b32.xlu1 %v1852_v40, %s1416_s3  ;;  %v289_v39 = vld [vmem:[#allocation2] ss:$2 sm:$0x3]  ;;  %v293_v40 = vstv %s291_s2 }
 0x10a   : > { %886 = vrot.lane.b32.xlu0 %v1862_v44, %s1417_s6  ;;  %838 = vrot.lane.b32.xlu1 %v1871_v47, %s1418_s8  ;;  %v296_v44 = vmul.f32 %v295_v11, %v290_v20  ;;  %s2350_s6 = sld [smem:[#allocation7_spill]]  ;;  %s2351_s8 = sld [smem:[#allocation8_spill]] }
 0x10e   : > { %918 = vrot.lane.b32.xlu0 %v1882_v10, %s1419_s22  ;;  %870 = vrot.lane.b32.xlu1 %v1897_v54, %s1420_s0  ;;  %v294_v10 = vmul.f32 %v293_v40, %v289_v39 }
 0x110   : > { %s2352_s22 = sshll.u32 %s2350_s6, 3 }
 0x112   : > { %950 = vrot.lane.b32.xlu0 %v1899_v59, %s1421_s23  ;;  %902 = vrot.lane.b32.xlu1 %v1911_v0, %s1422_s14  ;;  %v2091_v59 = vld [vmem:[%s2349_s19 + $0x1] ss:$8 sm:$0x3]  ;;  %s2353_s14 = sld [smem:[#allocation53_spill]] }
 0x116   : > { %982 = vrot.lane.b32.xlu0 %v1920_v17, %s1423_s25  ;;  %934 = vrot.lane.b32.xlu1 %v1934_v19, %s1424_s1  ;;  %v297_v17 = vadd.f32 %v296_v44, %v294_v10 }
 0x118   : > { %s184_s25 = scalar_lea.vmem %s2353_s14, %s2352_s22 }
 0x11a   : > { %1014 = vrot.lane.b32.xlu0 %v1946_v42, %s1425_s20  ;;  %966 = vrot.lane.b32.xlu1 %v1948_v1, %s1426_s16  ;;  %v2096_v42 = vld [vmem:[%s2349_s19] ss:$8 sm:$0x3] }
 0x11b   : > { %v298_v48 = vmul.f32 %v297_v17, %v2096_v42 }
 0x11e   : > { %1046 = vrot.lane.b32.xlu0 %v1963_v51, %s1427_s17  ;;  %998 = vrot.lane.b32.xlu1 %v1974_v57, %s1428_s24 }
 0x122   : > { %1030 = vrot.lane.b32.xlu1 %v1984_v35, %s1429_s21 }
 0x126   : > { %1062 = vrot.lane.b32.xlu1 %v1992_v27, %s1430_s10  ;;  %v2102_v27 = vld [vmem:[%s2349_s19 + $0x2] ss:$8 sm:$0x3] }
 0x138   : > { %v343_v47 = vpop.permute.xlu0 %342  ;;  %v311_v54 = vpop.permute.xlu1 %310 }
 0x139   : > { %v312_v0 = vrot.slane %v311_v54, 1  ;;  %v344_v19 = vrot.slane %v343_v47, 1 }
 0x13b   : > { %v314_v1 = vsel %vm313_vm10, %v311_v54, %v312_v0  ;;  %v346_v15 = vsel %vm345_vm11, %v343_v47, %v344_v19  ;;  %vm553_vm10 = vcmask 769024   ;;  %vm601_vm11 = vcmask 744448  }
 0x13c   : > { %v316_v51 = vmul.f32 %v2091_v59, %v314_v1  ;;  %v375_v57 = vpop.permute.xlu0 %374  ;;  %v327_v35 = vpop.permute.xlu1 %326  ;;  %v348_v34 = vmul.f32 %v2108_v49, %v346_v15 }
 0x13d   : > { %v328_v8 = vrot.slane %v327_v35, 1  ;;  %v376_v60 = vrot.slane %v375_v57, 1 }
 0x13e   : > { %v317_v26 = vadd.f32 %v316_v51, %v298_v48 }
 0x13f   : > { %v330_v61 = vsel %vm329_vm12, %v327_v35, %v328_v8  ;;  %v378_v24 = vsel %vm377_vm13, %v375_v57, %v376_v60  ;;  %vm585_vm12 = vcmask 752640   ;;  %vm633_vm13 = vcmask 654336  }
 0x140   : > { %v332_v28 = vmul.f32 %v2102_v27, %v330_v61  ;;  %v407_v29 = vpop.permute.xlu0 %406  ;;  %v359_v37 = vpop.permute.xlu1 %358  ;;  %v380_v16 = vmul.f32 %v2120_v2, %v378_v24 }
 0x141   : > { %v360_v7 = vrot.slane %v359_v37, 1  ;;  %v408_v43 = vrot.slane %v407_v29, 1 }
 0x142   : > { %v333_v56 = vadd.f32 %v332_v28, %v317_v26 }
 0x143   : > { %v362_v50 = vsel %vm361_vm14, %v359_v37, %v360_v7  ;;  %v410_v31 = vsel %vm409_vm15, %v407_v29, %v408_v43  ;;  %vm617_vm14 = vcmask 736256   ;;  %vm665_vm15 = vcmask 637952  }
 0x144   : > { %v349_v53 = vadd.f32 %v348_v34, %v333_v56  ;;  %v364_v62 = vmul.f32 %v2114_v5, %v362_v50  ;;  %v439_v9 = vpop.permute.xlu0 %438  ;;  %v391_v12 = vpop.permute.xlu1 %390  ;;  %v412_v36 = vmul.f32 %v410_v31, %v2096_v42 }
 0x145   : > { %v392_v14 = vrot.slane %v391_v12, 1  ;;  %v440_v58 = vrot.slane %v439_v9, 1 }
 0x146   : > { %v365_v13 = vadd.f32 %v364_v62, %v349_v53 }
 0x147   : > { %v394_v32 = vsel %vm393_vm0, %v391_v12, %v392_v14  ;;  %v442_v38 = vsel %vm441_vm1, %v439_v9, %v440_v58  ;;  %vm649_vm0 = vcmask 646144   ;;  %vm697_vm1 = vcmask 621568  }
 0x148   : > { %v381_v18 = vadd.f32 %v380_v16, %v365_v13  ;;  %v396_v52 = vmul.f32 %v2126_v63, %v394_v32  ;;  %v471_v3 = vpop.permute.xlu0 %470  ;;  %v423_v21 = vpop.permute.xlu1 %422  ;;  %v444_v6 = vmul.f32 %v2102_v27, %v442_v38 }
 0x149   : > { %v424_v22 = vrot.slane %v423_v21, 1  ;;  %v472_v23 = vrot.slane %v471_v3, 1 }
 0x14a   : > { %v397_v33 = vadd.f32 %v396_v52, %v381_v18 }
 0x14b   : > { %v426_v30 = vsel %vm425_vm2, %v423_v21, %v424_v22  ;;  %v474_v20 = vsel %vm473_vm3, %v471_v3, %v472_v23  ;;  %vm681_vm2 = vcmask 629760   ;;  %vm729_vm3 = vcmask 605184  }
 0x14c   : > { %v413_v41 = vadd.f32 %v412_v36, %v397_v33  ;;  %v428_v45 = vmul.f32 %v2091_v59, %v426_v30  ;;  %v503_v46 = vpop.permute.xlu0 %502  ;;  %v455_v55 = vpop.permute.xlu1 %454  ;;  %v476_v17 = vmul.f32 %v2114_v5, %v474_v20 }
 0x14d   : > { %v456_v4 = vrot.slane %v455_v55, 1  ;;  %v504_v39 = vrot.slane %v503_v46, 1 }
 0x14e   : > { %v429_v11 = vadd.f32 %v428_v45, %v413_v41 }
 0x14f   : > { %v458_v40 = vsel %vm457_vm4, %v455_v55, %v456_v4  ;;  %v506_v1 = vsel %vm505_vm5, %v503_v46, %v504_v39  ;;  %vm713_vm4 = vcmask 613376   ;;  %vm761_vm5 = vcmask 515072  }
 0x150   : > { %v445_v44 = vadd.f32 %v444_v6, %v429_v11  ;;  %v460_v47 = vmul.f32 %v2108_v49, %v458_v40  ;;  %v535_v10 = vpop.permute.xlu0 %534  ;;  %v487_v54 = vpop.permute.xlu1 %486  ;;  %v508_v61 = vmul.f32 %v2126_v63, %v506_v1 }
 0x151   : > { %v488_v0 = vrot.slane %v487_v54, 1  ;;  %v536_v51 = vrot.slane %v535_v10, 1 }
 0x152   : > { %v461_v19 = vadd.f32 %v460_v47, %v445_v44 }
 0x153   : > { %v490_v57 = vsel %vm489_vm6, %v487_v54, %v488_v0  ;;  %v538_v28 = vsel %vm537_vm7, %v535_v10, %v536_v51  ;;  %vm745_vm6 = vcmask 523264   ;;  %vm793_vm7 = vcmask 498688  }
 0x154   : > { %v477_v35 = vadd.f32 %v476_v17, %v461_v19  ;;  %v492_v8 = vmul.f32 %v2120_v2, %v490_v57  ;;  %v567_v48 = vpop.permute.xlu0 %566  ;;  %v519_v15 = vpop.permute.xlu1 %518  ;;  %v540_v50 = vmul.f32 %v2091_v59, %v538_v28 }
 0x155   : > { %v520_v60 = vrot.slane %v519_v15, 1  ;;  %v568_v29 = vrot.slane %v567_v48, 1 }
 0x156   : > { %v493_v26 = vadd.f32 %v492_v8, %v477_v35 }
 0x157   : > { %v522_v37 = vsel %vm521_vm8, %v519_v15, %v520_v60  ;;  %v570_v62 = vsel %vm569_vm9, %v567_v48, %v568_v29  ;;  %vm777_vm8 = vcmask 506880   ;;  %vm825_vm9 = vcmask 482304  }
 0x158   : > { %v509_v7 = vadd.f32 %v508_v61, %v493_v26  ;;  %v524_v34 = vmul.f32 %v522_v37, %v2096_v42  ;;  %v599_v56 = vpop.permute.xlu0 %598  ;;  %v551_v24 = vpop.permute.xlu1 %550  ;;  %v572_v32 = vmul.f32 %v2108_v49, %v570_v62 }
 0x159   : > { %v552_v43 = vrot.slane %v551_v24, 1  ;;  %v600_v9 = vrot.slane %v599_v56, 1 }
 0x15a   : > { %v525_v53 = vadd.f32 %v524_v34, %v509_v7 }
 0x15b   : > { %v554_v12 = vsel %vm553_vm10, %v551_v24, %v552_v43  ;;  %v602_v52 = vsel %vm601_vm11, %v599_v56, %v600_v9  ;;  %vm809_vm10 = vcmask 490496   ;;  %vm857_vm11 = vcmask 392192  }
 0x15c   : > { %v541_v14 = vadd.f32 %v540_v50, %v525_v53  ;;  %v556_v16 = vmul.f32 %v2102_v27, %v554_v12  ;;  %v631_v13 = vpop.permute.xlu0 %630  ;;  %v583_v31 = vpop.permute.xlu1 %582  ;;  %v604_v30 = vmul.f32 %v2120_v2, %v602_v52 }
 0x15d   : > { %v584_v58 = vrot.slane %v583_v31, 1  ;;  %v632_v3 = vrot.slane %v631_v13, 1 }
 0x15e   : > { %v557_v18 = vadd.f32 %v556_v16, %v541_v14 }
 0x15f   : > { %v586_v21 = vsel %vm585_vm12, %v583_v31, %v584_v58  ;;  %v634_v45 = vsel %vm633_vm13, %v631_v13, %v632_v3  ;;  %vm841_vm12 = vcmask 474112   ;;  %vm889_vm13 = vcmask 375808  }
 0x160   : > { %v573_v22 = vadd.f32 %v572_v32, %v557_v18  ;;  %v588_v36 = vmul.f32 %v2114_v5, %v586_v21  ;;  %v663_v33 = vpop.permute.xlu0 %662  ;;  %v615_v38 = vpop.permute.xlu1 %614  ;;  %v636_v40 = vmul.f32 %v634_v45, %v2096_v42 }
 0x161   : > { %v616_v23 = vrot.slane %v615_v38, 1  ;;  %v664_v46 = vrot.slane %v663_v33, 1 }
 0x162   : > { %v589_v41 = vadd.f32 %v588_v36, %v573_v22 }
 0x163   : > { %v618_v55 = vsel %vm617_vm14, %v615_v38, %v616_v23  ;;  %v666_v47 = vsel %vm665_vm15, %v663_v33, %v664_v46  ;;  %vm873_vm14 = vcmask 384000   ;;  %vm921_vm15 = vcmask 359424  }
 0x164   : > { %v605_v4 = vadd.f32 %v604_v30, %v589_v41  ;;  %v620_v6 = vmul.f32 %v2126_v63, %v618_v55  ;;  %v695_v11 = vpop.permute.xlu0 %694  ;;  %v647_v20 = vpop.permute.xlu1 %646  ;;  %v668_v57 = vmul.f32 %v2102_v27, %v666_v47 }
 0x165   : > { %v648_v39 = vrot.slane %v647_v20, 1  ;;  %v696_v10 = vrot.slane %v695_v11, 1 }
 0x166   : > { %v621_v44 = vadd.f32 %v620_v6, %v605_v4 }
 0x167   : > { %v650_v54 = vsel %vm649_vm0, %v647_v20, %v648_v39  ;;  %v698_v8 = vsel %vm697_vm1, %v695_v11, %v696_v10  ;;  %vm905_vm0 = vcmask 367616   ;;  %vm953_vm1 = vcmask 343040  }
 0x168   : > { %v637_v0 = vadd.f32 %v636_v40, %v621_v44  ;;  %v652_v17 = vmul.f32 %v2091_v59, %v650_v54  ;;  %v727_v19 = vpop.permute.xlu0 %726  ;;  %v679_v1 = vpop.permute.xlu1 %678  ;;  %v700_v37 = vmul.f32 %v2114_v5, %v698_v8 }
 0x169   : > { %v680_v51 = vrot.slane %v679_v1, 1  ;;  %v728_v48 = vrot.slane %v727_v19, 1 }
 0x16a   : > { %v653_v35 = vadd.f32 %v652_v17, %v637_v0 }
 0x16b   : > { %v682_v15 = vsel %vm681_vm2, %v679_v1, %v680_v51  ;;  %v730_v34 = vsel %vm729_vm3, %v727_v19, %v728_v48  ;;  %vm937_vm2 = vcmask 351232   ;;  %vm985_vm3 = vcmask 252928  }
 0x16c   : > { %v669_v60 = vadd.f32 %v668_v57, %v653_v35  ;;  %v684_v61 = vmul.f32 %v2108_v49, %v682_v15  ;;  %v759_v26 = vpop.permute.xlu0 %758  ;;  %v711_v28 = vpop.permute.xlu1 %710  ;;  %v732_v12 = vmul.f32 %v2126_v63, %v730_v34 }
 0x16d   : > { %v712_v29 = vrot.slane %v711_v28, 1  ;;  %v760_v56 = vrot.slane %v759_v26, 1 }
 0x16e   : > { %v685_v7 = vadd.f32 %v684_v61, %v669_v60 }
 0x16f   : > { %v714_v24 = vsel %vm713_vm4, %v711_v28, %v712_v29  ;;  %v762_v16 = vsel %vm761_vm5, %v759_v26, %v760_v56  ;;  %vm969_vm4 = vcmask 261120   ;;  %vm1017_vm5 = vcmask 236544  }
 0x170   : > { %v701_v43 = vadd.f32 %v700_v37, %v685_v7  ;;  %v716_v50 = vmul.f32 %v2120_v2, %v714_v24  ;;  %v791_v53 = vpop.permute.xlu0 %790  ;;  %v743_v62 = vpop.permute.xlu1 %742  ;;  %v764_v21 = vmul.f32 %v2091_v59, %v762_v16 }
 0x171   : > { %v744_v9 = vrot.slane %v743_v62, 1  ;;  %v792_v13 = vrot.slane %v791_v53, 1 }
 0x172   : > { %v717_v14 = vadd.f32 %v716_v50, %v701_v43 }
 0x173   : > { %v746_v31 = vsel %vm745_vm6, %v743_v62, %v744_v9  ;;  %v794_v36 = vsel %vm793_vm7, %v791_v53, %v792_v13  ;;  %vm1001_vm6 = vcmask 244736   ;;  %vm1049_vm7 = vcmask 220160  }
 0x174   : > { %v733_v58 = vadd.f32 %v732_v12, %v717_v14  ;;  %v748_v32 = vmul.f32 %v746_v31, %v2096_v42  ;;  %v823_v18 = vpop.permute.xlu0 %822  ;;  %v775_v52 = vpop.permute.xlu1 %774  ;;  %v796_v55 = vmul.f32 %v2108_v49, %v794_v36 }
 0x175   : > { %v776_v3 = vrot.slane %v775_v52, 1  ;;  %v824_v33 = vrot.slane %v823_v18, 1 }
 0x176   : > { %v749_v22 = vadd.f32 %v748_v32, %v733_v58 }
 0x177   : > { %v778_v38 = vsel %vm777_vm8, %v775_v52, %v776_v3  ;;  %v826_v6 = vsel %vm825_vm9, %v823_v18, %v824_v33  ;;  %vm1033_vm8 = vcmask 228352   ;;  %vm1065_vm9 = vcmask 211968  }
 0x178   : > { %v765_v23 = vadd.f32 %v764_v21, %v749_v22  ;;  %v780_v30 = vmul.f32 %v2102_v27, %v778_v38  ;;  %v855_v41 = vpop.permute.xlu0 %854  ;;  %v807_v45 = vpop.permute.xlu1 %806  ;;  %v828_v54 = vmul.f32 %v2120_v2, %v826_v6 }
 0x179   : > { %v808_v46 = vrot.slane %v807_v45, 1  ;;  %v856_v11 = vrot.slane %v855_v41, 1 }
 0x17a   : > { %v781_v4 = vadd.f32 %v780_v30, %v765_v23 }
 0x17b   : > { %v810_v20 = vsel %vm809_vm10, %v807_v45, %v808_v46  ;;  %v858_v17 = vsel %vm857_vm11, %v855_v41, %v856_v11 }
 0x17c   : > { %v797_v39 = vadd.f32 %v796_v55, %v781_v4  ;;  %v812_v40 = vmul.f32 %v2114_v5, %v810_v20  ;;  %v887_v44 = vpop.permute.xlu0 %886  ;;  %v839_v47 = vpop.permute.xlu1 %838  ;;  %v860_v15 = vmul.f32 %v858_v17, %v2096_v42 }
 0x17d   : > { %v840_v10 = vrot.slane %v839_v47, 1  ;;  %v888_v19 = vrot.slane %v887_v44, 1 }
 0x17e   : > { %v813_v0 = vadd.f32 %v812_v40, %v797_v39 }
 0x17f   : > { %v842_v1 = vsel %vm841_vm12, %v839_v47, %v840_v10  ;;  %v890_v61 = vsel %vm889_vm13, %v887_v44, %v888_v19 }
 0x180   : > { %v829_v51 = vadd.f32 %v828_v54, %v813_v0  ;;  %v844_v57 = vmul.f32 %v2126_v63, %v842_v1  ;;  %v919_v35 = vpop.permute.xlu0 %918  ;;  %v871_v8 = vpop.permute.xlu1 %870  ;;  %v892_v24 = vmul.f32 %v2102_v27, %v890_v61 }
 0x181   : > { %v872_v48 = vrot.slane %v871_v8, 1  ;;  %v920_v26 = vrot.slane %v919_v35, 1 }
 0x182   : > { %v845_v60 = vadd.f32 %v844_v57, %v829_v51 }
 0x183   : > { %v874_v28 = vsel %vm873_vm14, %v871_v8, %v872_v48  ;;  %v922_v50 = vsel %vm921_vm15, %v919_v35, %v920_v26 }
 0x184   : > { %v861_v29 = vadd.f32 %v860_v15, %v845_v60  ;;  %v876_v37 = vmul.f32 %v2091_v59, %v874_v28  ;;  %v951_v7 = vpop.permute.xlu0 %950  ;;  %v903_v34 = vpop.permute.xlu1 %902  ;;  %v924_v31 = vmul.f32 %v2114_v5, %v922_v50 }
 0x185   : > { %v904_v56 = vrot.slane %v903_v34, 1  ;;  %v952_v53 = vrot.slane %v951_v7, 1 }
 0x186   : > { %v877_v43 = vadd.f32 %v876_v37, %v861_v29  ;;  %v1084_v37 = vsub.s32 1, %v1484_v25 }
 0x187   : > { %v906_v62 = vsel %vm905_vm0, %v903_v34, %v904_v56  ;;  %v954_v32 = vsel %vm953_vm1, %v951_v7, %v952_v53 }
 0x188   : > { %v893_v9 = vadd.f32 %v892_v24, %v877_v43  ;;  %v908_v12 = vmul.f32 %v2108_v49, %v906_v62  ;;  %v983_v14 = vpop.permute.xlu0 %982  ;;  %v935_v16 = vpop.permute.xlu1 %934  ;;  %v956_v38 = vmul.f32 %v2126_v63, %v954_v32 }
 0x189   : > { %v936_v13 = vrot.slane %v935_v16, 1  ;;  %v984_v18 = vrot.slane %v983_v14, 1 }
 0x18a   : > { %v909_v58 = vadd.f32 %v908_v12, %v893_v9 }
 0x18b   : > { %v938_v52 = vsel %vm937_vm2, %v935_v16, %v936_v13  ;;  %v986_v30 = vsel %vm985_vm3, %v983_v14, %v984_v18 }
 0x18c   : > { %v925_v3 = vadd.f32 %v924_v31, %v909_v58  ;;  %v940_v21 = vmul.f32 %v2120_v2, %v938_v52  ;;  %v1015_v22 = vpop.permute.xlu0 %1014  ;;  %v967_v36 = vpop.permute.xlu1 %966  ;;  %v988_v20 = vmul.f32 %v2091_v59, %v986_v30 }
 0x18d   : > { %v968_v33 = vrot.slane %v967_v36, 1  ;;  %v1016_v41 = vrot.slane %v1015_v22, 1 }
 0x18e   : > { %v941_v23 = vadd.f32 %v940_v21, %v925_v3 }
 0x18f   : > { %v970_v45 = vsel %vm969_vm4, %v967_v36, %v968_v33  ;;  %v1018_v40 = vsel %vm1017_vm5, %v1015_v22, %v1016_v41 }
 0x190   : > { %v957_v46 = vadd.f32 %v956_v38, %v941_v23  ;;  %v972_v55 = vmul.f32 %v970_v45, %v2096_v42  ;;  %v1047_v4 = vpop.permute.xlu0 %1046  ;;  %v999_v6 = vpop.permute.xlu1 %998  ;;  %v1020_v19 = vmul.f32 %v2108_v49, %v1018_v40 }
 0x191   : > { %v1000_v11 = vrot.slane %v999_v6, 1  ;;  %v1048_v44 = vrot.slane %v1047_v4, 1 }
 0x192   : > { %v973_v39 = vadd.f32 %v972_v55, %v957_v46 }
 0x193   : > { %v1002_v47 = vsel %vm1001_vm6, %v999_v6, %v1000_v11  ;;  %v1050_v1 = vsel %vm1049_vm7, %v1047_v4, %v1048_v44 }
 0x194   : > { %v989_v10 = vadd.f32 %v988_v20, %v973_v39  ;;  %v1004_v54 = vmul.f32 %v2102_v27, %v1002_v47  ;;  %v1031_v0 = vpop.permute.xlu1 %1030  ;;  %v1052_v48 = vmul.f32 %v2120_v2, %v1050_v1 }
 0x195   : > { %v1032_v17 = vrot.slane %v1031_v0, 1 }
 0x196   : > { %v1005_v42 = vadd.f32 %v1004_v54, %v989_v10 }
 0x197   : > { %v1034_v51 = vsel %vm1033_vm8, %v1031_v0, %v1032_v17 }
 0x198   : > { %v1021_v57 = vadd.f32 %v1020_v19, %v1005_v42  ;;  %v1036_v35 = vmul.f32 %v2114_v5, %v1034_v51  ;;  %v1063_v59 = vpop.permute.xlu1 %1062  ;;  %v1080_v5 = vsub.s32 0, %v1484_v25 }
 0x199   : > { %v1064_v8 = vrot.slane %v1063_v59, 1 }
 0x19a   : > { %v1037_v15 = vadd.f32 %v1036_v35, %v1021_v57 }
 0x19b   : > { %v1066_v60 = vsel %vm1065_vm9, %v1063_v59, %v1064_v8 }
 0x19c   : > { %v1053_v27 = vadd.f32 %v1052_v48, %v1037_v15  ;;  %v1068_v61 = vmul.f32 %v2126_v63, %v1066_v60  ;;  %v1351_v63 = vld [vmem:[%s2351_s8] sm:$0xff] }
 0x19e   : > { %v1069_v26 = vadd.f32 %v1068_v61, %v1053_v27 }
 0x1a0   : > { %v1271_v49 = vmul.f32 -1.442695, %v1069_v26 }
 0x1a2   : > { %1347 = vpow2.f32 %v1271_v49 }
 0x1ac   : > { %v1348_v28 = vpop.eup %1347 }
 0x1ad   : > { %v1073_v29 = vadd.f32 1.0, %v1348_v28 }
 0x1af   : > { %1349 = vrcp.f32 %v1073_v29 }
 0x1b9   : > { %v1350_v7 = vpop.eup %1349 }
 0x1ba   : > { %v1081_v34 = vrot.slane %v1350_v7, %v1080_v5  ;;  %v1085_v2 = vrot.slane %v1350_v7, %v1084_v37 }
 0x1bc   : > { %v1086_v56 = vcombine.low %v1081_v34, %v1085_v2 }
 0x1be   : > { %v1088_v24 = vmul.f32 %v1351_v63, %v1086_v56 }
 0x1c0   : > { %1089 = vst [vmem:[%s184_s25] sm:$0xff] %v1088_v24 }
 0x1c1 PF: > { %s2354_s1 = sld [smem:[#allocation6_spill]] }
 0x1c7   : > { %s14_s12 = sadd.s32 1, %s2354_s1  }
 0x1c8   : > { %p11_p1 = scmp.ge.s32.totalorder %s14_s12, 4  }
 0x1ca   :  { %13 = sbr.rel (!%p11_p1) target bundleno = 6 (0x6), region = 74 }
 0x1d1   :  { %1111 = vsyncpa [#allocation4], 1 }
 0x1d2   :  { %1113 = vsyncpa [#allocation4 + $0x1], 1 }

</bundles_post_ra>
